<compile_context>
chip_gen: v6e
topology: v6e:2x2x1
jax: 0.10.0
libtpu: 0.0.40
codegen_flags: <defaults>
</compile_context>

<pallas_src>
import jax
import jax.numpy as jnp
from jax.experimental import pallas as pl


_LAYER_CFG = ((4, 2, 0), (8, 4, 1), (16, 8, 0))   # (kernel_size, stride, padding); K == 2*s


def _pad_cols(a, left, right):
    """Zero-pad a 2-D value along the lane (last) axis; pure register op."""
    parts = []
    if left:
        parts.append(jnp.zeros((a.shape[0], left), a.dtype))
    parts.append(a)
    if right:
        parts.append(jnp.zeros((a.shape[0], right), a.dtype))
    return parts[0] if len(parts) == 1 else jnp.concatenate(parts, axis=1)


def _tree_sum(xs):
    """Pairwise sum for better VPU ILP than a serial chain."""
    xs = list(xs)
    while len(xs) > 1:
        nxt = [xs[i] + xs[i + 1] for i in range(0, len(xs) - 1, 2)]
        if len(xs) % 2:
            nxt.append(xs[-1])
        xs = nxt
    return xs[0]


# ---------------------------------------------------------------------------
# Fused kernel factory
# ---------------------------------------------------------------------------
def _make_fused_kernel(B, L0, Cout, layer_cfg):
    def kernel(x_ref, w1_ref, w2_ref, w3_ref,
               g1_ref, be1_ref, g2_ref, be2_ref, g3_ref, be3_ref, o_ref):
        w_refs = (w1_ref, w2_ref, w3_ref)
        g_refs = (g1_ref, g2_ref, g3_ref)
        be_refs = (be1_ref, be2_ref, be3_ref)

        # Batch-stacked, channel-first activations: (C, B*L), positions on lanes.
        h = jnp.concatenate([x_ref[b] for b in range(B)], axis=1)
        lin = L0

        for layer in range(3):
            K, s, p = layer_cfg[layer]
            assert K == 2 * s                      # residue trick relies on this
            lups = lin * s + 1                     # stuffed length of a residue block
            lpad = (lin + 1) * s                   # == (lin-1)*s + K, full overlap-add len
            lout = lpad - 2 * p

            wmat = w_refs[layer][...]              # (K*Cout, Cin) pre-folded

            # ---- channel mix: ONE batch-stacked MXU GEMM ---------------------
            # z[k*Cout+co, b*lin+t] = sum_ci w[ci,co,k] * h[ci, b*lin+t]
            z = jnp.dot(wmat, h, preferred_element_type=jnp.float32)   # (K*C, B*lin)

            # ---- 0/1 zero-stuffing matrix, built in-registers ----------------
            # scat[m, u] = (u == m*s)
            row = jax.lax.broadcasted_iota(jnp.int32, (lin + 1, lups), 0)
            col = jax.lax.broadcasted_iota(jnp.int32, (lin + 1, lups), 1)
            scat = jnp.where(col == row * s, jnp.float32(1.0), jnp.float32(0.0))
            # TODO(synk): on v6e/v7x the (exact) 0/1 scat could be cast to bf16 to feed
            # the 256-wide bf16 MXU; kept f32 here for identical numerics on v5e/v6e/v7x
            # (the kernel is not MXU-bound at these shapes).

            pre_parts = []
            for b in range(B):
                zb = z[:, b * lin:(b + 1) * lin]               # (K*C, lin)
                # Residue pre-combination: taps r and r+s of residue r merge into one
                # block of lin+1 positions:  zc_r[:, m] = z_r[:, m] + z_{r+s}[:, m-1]
                zlo = zb[:s * Cout, :]
                zhi = zb[s * Cout:, :]
                zc = _pad_cols(zlo, 0, 1) + _pad_cols(zhi, 1, 0)   # (s*C, lin+1)
                # Zero-stuff along positions on the MXU.
                u = jnp.dot(zc, scat, preferred_element_type=jnp.float32)  # (s*C, lups)
                # Register overlap-add: residue r lands at lane offset r.
                taps = [_pad_cols(u[r * Cout:(r + 1) * Cout, :], r, s - 1 - r)
                        for r in range(s)]
                acc = _tree_sum(taps)                          # (C, lpad)
                pre_parts.append(acc if p == 0 else acc[:, p:p + lout])

            pre = (pre_parts[0] if B == 1
                   else jnp.concatenate(pre_parts, axis=1))    # (C, B*lout)

            # ---- BatchNorm1d (training-mode batch stats) + ReLU, one pass -----
            # Conv bias omitted on purpose: a per-channel constant is exactly cancelled
            # by the mean subtraction below (variance unchanged).
            inv_n = 1.0 / float(B * lout)
            mean = jnp.sum(pre, axis=1, keepdims=True) * inv_n
            ex2 = jnp.sum(pre * pre, axis=1, keepdims=True) * inv_n
            var = jnp.maximum(ex2 - mean * mean, 0.0)
            scale = jax.lax.rsqrt(var + 1e-5) * g_refs[layer][...]
            shift = be_refs[layer][...] - mean * scale
            h = jnp.maximum(pre * scale + shift, 0.0)
            lin = lout

        # Split batches back out; already in PyTorch (B, C, L) layout.
        for b in range(B):
            o_ref[b, :, :] = h[:, b * lin:(b + 1) * lin]

    return kernel


# ---------------------------------------------------------------------------
# One-time parameter folding (hoisted out of the per-call path)
# ---------------------------------------------------------------------------
def fold_params(params):
    def fold_weight(w):            # (Cin, Cout, K) -> (K*Cout, Cin)
        ci, co, k = w.shape
        return jnp.transpose(jnp.asarray(w, jnp.float32), (2, 1, 0)).reshape(k * co, ci)

    def col(v):                    # (C,) -> (C, 1): broadcasts along lanes in-kernel
        return jnp.asarray(v, jnp.float32).reshape(-1, 1)

    # Conv biases b1/b2/b3 intentionally not folded in: they are mathematically
    # cancelled by the training-mode BatchNorm mean subtraction (dead work).
    return {
        "w1": fold_weight(params["w1"]),
        "w2": fold_weight(params["w2"]),
        "w3": fold_weight(params["w3"]),
        "g1": col(params["g1"]), "be1": col(params["be1"]),
        "g2": col(params["g2"]), "be2": col(params["be2"]),
        "g3": col(params["g3"]), "be3": col(params["be3"]),
    }


# ---------------------------------------------------------------------------
# Wrapper
# ---------------------------------------------------------------------------
def basic_conv_forward(x, folded):
    """x: (B, L, input_dim) -- the tensor the PyTorch module receives (it transposes
    internally).  Returns (B, output_dim, L_out) in PyTorch NCL layout."""
    B, L0, _ = x.shape
    Cout = folded["g1"].shape[0]

    lin = L0
    for (K, s, p) in _LAYER_CFG:
        lin = (lin - 1) * s + K - 2 * p
    lout_final = lin

    # Mirrors the module's x.transpose(-2, -1); tiny tensor, only per-call XLA op.
    x_cf = jnp.transpose(x, (0, 2, 1)).astype(jnp.float32)          # (B, Cin, L0)

    kernel = _make_fused_kernel(B, L0, Cout, _LAYER_CFG)

    # Gridless call: whole-array (default) BlockSpecs into VMEM, single invocation,
    # no scratch -- all intermediates stay in vregs/VMEM values.
    return pl.pallas_call(
        kernel,
        out_shape=jax.ShapeDtypeStruct((B, Cout, lout_final), jnp.float32),
    )(x_cf, folded["w1"], folded["w2"], folded["w3"],
      folded["g1"], folded["be1"], folded["g2"], folded["be2"],
      folded["g3"], folded["be3"])


# ---------------------------------------------------------------------------
# Parameter init (matches PyTorch shapes) + pure-JAX reference for self-check
# ---------------------------------------------------------------------------
def init_params(key, input_dim, output_dim):
    ks = jax.random.split(key, 6)

    def u(k, shape, fan):
        bound = 1.0 / jnp.sqrt(fan)
        return jax.random.uniform(k, shape, jnp.float32, -bound, bound)

    return {
        # ConvTranspose1d weight layout: (in_channels, out_channels, kernel)
        "w1": u(ks[0], (input_dim, output_dim, 4), input_dim * 4),
        "b1": u(ks[1], (output_dim,), input_dim * 4),
        "w2": u(ks[2], (output_dim, output_dim, 8), output_dim * 8),
        "b2": u(ks[3], (output_dim,), output_dim * 8),
        "w3": u(ks[4], (output_dim, output_dim, 16), output_dim * 16),
        "b3": u(ks[5], (output_dim,), output_dim * 16),
        # BatchNorm1d defaults: gamma = 1, beta = 0
        "g1": jnp.ones((output_dim,), jnp.float32),
        "be1": jnp.zeros((output_dim,), jnp.float32),
        "g2": jnp.ones((output_dim,), jnp.float32),
        "be2": jnp.zeros((output_dim,), jnp.float32),
        "g3": jnp.ones((output_dim,), jnp.float32),
        "be3": jnp.zeros((output_dim,), jnp.float32),
    }


def _reference_forward(x, params):
    """Pure-JAX (non-Pallas) reference of the PyTorch forward (with conv biases)."""
    h = jnp.transpose(x, (0, 2, 1)).astype(jnp.float32)
    names = (("w1", "b1", "g1", "be1"), ("w2", "b2", "g2", "be2"), ("w3", "b3", "g3", "be3"))
    for (wk, bk, gk, bek), (K, s, p) in zip(names, _LAYER_CFG):
        w = params[wk].astype(jnp.float32)                 # (Cin, Cout, K)
        B, _, Lin = h.shape
        Cout = w.shape[1]
        lpad = (Lin - 1) * s + K
        out = jnp.zeros((B, Cout, lpad), jnp.float32)
        for k in range(K):
            contrib = jnp.einsum("bit,io->bot", h, w[:, :, k])
            out = out.at[:, :, k: k + (Lin - 1) * s + 1: s].add(contrib)
        out = out[:, :, p: lpad - p] + params[bk].reshape(1, -1, 1)
        mean = jnp.mean(out, axis=(0, 2), keepdims=True)
        var = jnp.mean((out - mean) ** 2, axis=(0, 2), keepdims=True)
        out = (out - mean) * jax.lax.rsqrt(var + 1e-5)
        out = out * params[gk].reshape(1, -1, 1) + params[bek].reshape(1, -1, 1)
        h = jnp.maximum(out, 0.0)
    return h


if __name__ == "__main__":
    B, L, input_dim, output_dim = 2, 8, 4, 8
    # target_seq_len = 600 (stored but unused by the PyTorch forward)

    key = jax.random.PRNGKey(0)
    kx, kp = jax.random.split(key)
    x = jax.random.normal(kx, (B, L, input_dim), dtype=jnp.float32)
    params = init_params(kp, input_dim, output_dim)

    folded = fold_params(params)                    # one-time folding, not per-call
    fwd = jax.jit(basic_conv_forward)

    out = jax.block_until_ready(fwd(x, folded))

    # L: 8 -> 18 -> 74 -> 600 ; ReLU output is non-negative.
    assert out.shape == (B, output_dim, 600), out.shape
    assert bool(jnp.all(out >= 0.0))

    # Self-check against a pure-JAX reference of the PyTorch forward semantics.
    ref = _reference_forward(x, params)
    max_err = float(jnp.max(jnp.abs(out - ref)))
    assert max_err < 2e-3, f"max abs err vs reference: {max_err}"

    print("KERNEL_OK")
</pallas_src>

<mosaic_0001>
module attributes {stable_mosaic.version = 11 : i64} {
  func.func @kernel(%arg0: memref<2x4x8xf32, #tpu.memory_space<vmem>>, %arg1: memref<32x4xf32, #tpu.memory_space<vmem>>, %arg2: memref<64x8xf32, #tpu.memory_space<vmem>>, %arg3: memref<128x8xf32, #tpu.memory_space<vmem>>, %arg4: memref<8x1xf32, #tpu.memory_space<vmem>>, %arg5: memref<8x1xf32, #tpu.memory_space<vmem>>, %arg6: memref<8x1xf32, #tpu.memory_space<vmem>>, %arg7: memref<8x1xf32, #tpu.memory_space<vmem>>, %arg8: memref<8x1xf32, #tpu.memory_space<vmem>>, %arg9: memref<8x1xf32, #tpu.memory_space<vmem>>, %arg10: memref<2x8x600xf32, #tpu.memory_space<vmem>>) attributes {dimension_semantics = [], scalar_prefetch = 0 : i64, scratch_operands = 0 : i64, tpu.core_type = #tpu.core_type<tc>} {
    %c0 = arith.constant 0 : index
    %c0_0 = arith.constant 0 : index
    %c0_1 = arith.constant 0 : index
    %0 = vector.load %arg0[%c0, %c0_0, %c0_1] : memref<2x4x8xf32, #tpu.memory_space<vmem>>, vector<1x4x8xf32>
    %1 = vector.shape_cast %0 : vector<1x4x8xf32> to vector<4x8xf32>
    %c1 = arith.constant 1 : index
    %c0_2 = arith.constant 0 : index
    %c0_3 = arith.constant 0 : index
    %2 = vector.load %arg0[%c1, %c0_2, %c0_3] : memref<2x4x8xf32, #tpu.memory_space<vmem>>, vector<1x4x8xf32>
    %3 = vector.shape_cast %2 : vector<1x4x8xf32> to vector<4x8xf32>
    %4 = tpu.concatenate %1, %3 in 1 : vector<4x8xf32>, vector<4x8xf32> -> vector<4x16xf32>
    %c0_4 = arith.constant 0 : index
    %c0_5 = arith.constant 0 : index
    %5 = vector.load %arg1[%c0_4, %c0_5] : memref<32x4xf32, #tpu.memory_space<vmem>>, vector<32x4xf32>
    %cst = arith.constant dense<0.000000e+00> : vector<32x16xf32>
    %6 = tpu.matmul %5, %4, %cst {dimension_numbers = #tpu.dot_dimension_numbers<[1], [0], [0], [1], [0, 0, 1, 1], [], []>} : vector<32x4xf32>, vector<4x16xf32>, vector<32x16xf32> -> vector<32x16xf32>
    %7 = tpu.iota {dimensions = array<i32: 0>} : vector<9x17xi32>
    %8 = tpu.iota {dimensions = array<i32: 1>} : vector<9x17xi32>
    %c2_i32 = arith.constant 2 : i32
    %9 = vector.broadcast %c2_i32 : i32 to vector<9x17xi32>
    %10 = arith.muli %7, %9 : vector<9x17xi32>
    %11 = arith.cmpi eq, %8, %10 : vector<9x17xi32>
    %cst_6 = arith.constant 1.000000e+00 : f32
    %cst_7 = arith.constant 0.000000e+00 : f32
    %12 = vector.broadcast %cst_6 : f32 to vector<9x17xf32>
    %13 = vector.broadcast %cst_7 : f32 to vector<9x17xf32>
    %14 = arith.select %11, %12, %13 : vector<9x17xi1>, vector<9x17xf32>
    %15 = vector.extract_strided_slice %6 {offsets = [0, 0], sizes = [32, 8], strides = [1, 1]} : vector<32x16xf32> to vector<32x8xf32>
    %16 = vector.extract_strided_slice %15 {offsets = [0, 0], sizes = [16, 8], strides = [1, 1]} : vector<32x8xf32> to vector<16x8xf32>
    %17 = vector.extract_strided_slice %15 {offsets = [16, 0], sizes = [16, 8], strides = [1, 1]} : vector<32x8xf32> to vector<16x8xf32>
    %cst_8 = arith.constant 0.000000e+00 : f32
    %18 = vector.broadcast %cst_8 : f32 to vector<16x1xf32>
    %19 = tpu.concatenate %16, %18 in 1 : vector<16x8xf32>, vector<16x1xf32> -> vector<16x9xf32>
    %cst_9 = arith.constant 0.000000e+00 : f32
    %20 = vector.broadcast %cst_9 : f32 to vector<16x1xf32>
    %21 = tpu.concatenate %20, %17 in 1 : vector<16x1xf32>, vector<16x8xf32> -> vector<16x9xf32>
    %22 = arith.addf %19, %21 : vector<16x9xf32>
    %cst_10 = arith.constant dense<0.000000e+00> : vector<16x17xf32>
    %23 = tpu.matmul %22, %14, %cst_10 {dimension_numbers = #tpu.dot_dimension_numbers<[1], [0], [0], [1], [0, 0, 1, 1], [], []>} : vector<16x9xf32>, vector<9x17xf32>, vector<16x17xf32> -> vector<16x17xf32>
    %24 = vector.extract_strided_slice %23 {offsets = [0, 0], sizes = [8, 17], strides = [1, 1]} : vector<16x17xf32> to vector<8x17xf32>
    %cst_11 = arith.constant 0.000000e+00 : f32
    %25 = vector.broadcast %cst_11 : f32 to vector<8x1xf32>
    %26 = tpu.concatenate %24, %25 in 1 : vector<8x17xf32>, vector<8x1xf32> -> vector<8x18xf32>
    %27 = vector.extract_strided_slice %23 {offsets = [8, 0], sizes = [8, 17], strides = [1, 1]} : vector<16x17xf32> to vector<8x17xf32>
    %cst_12 = arith.constant 0.000000e+00 : f32
    %28 = vector.broadcast %cst_12 : f32 to vector<8x1xf32>
    %29 = tpu.concatenate %28, %27 in 1 : vector<8x1xf32>, vector<8x17xf32> -> vector<8x18xf32>
    %30 = arith.addf %26, %29 : vector<8x18xf32>
    %31 = vector.extract_strided_slice %6 {offsets = [0, 8], sizes = [32, 8], strides = [1, 1]} : vector<32x16xf32> to vector<32x8xf32>
    %32 = vector.extract_strided_slice %31 {offsets = [0, 0], sizes = [16, 8], strides = [1, 1]} : vector<32x8xf32> to vector<16x8xf32>
    %33 = vector.extract_strided_slice %31 {offsets = [16, 0], sizes = [16, 8], strides = [1, 1]} : vector<32x8xf32> to vector<16x8xf32>
    %cst_13 = arith.constant 0.000000e+00 : f32
    %34 = vector.broadcast %cst_13 : f32 to vector<16x1xf32>
    %35 = tpu.concatenate %32, %34 in 1 : vector<16x8xf32>, vector<16x1xf32> -> vector<16x9xf32>
    %cst_14 = arith.constant 0.000000e+00 : f32
    %36 = vector.broadcast %cst_14 : f32 to vector<16x1xf32>
    %37 = tpu.concatenate %36, %33 in 1 : vector<16x1xf32>, vector<16x8xf32> -> vector<16x9xf32>
    %38 = arith.addf %35, %37 : vector<16x9xf32>
    %cst_15 = arith.constant dense<0.000000e+00> : vector<16x17xf32>
    %39 = tpu.matmul %38, %14, %cst_15 {dimension_numbers = #tpu.dot_dimension_numbers<[1], [0], [0], [1], [0, 0, 1, 1], [], []>} : vector<16x9xf32>, vector<9x17xf32>, vector<16x17xf32> -> vector<16x17xf32>
    %40 = vector.extract_strided_slice %39 {offsets = [0, 0], sizes = [8, 17], strides = [1, 1]} : vector<16x17xf32> to vector<8x17xf32>
    %cst_16 = arith.constant 0.000000e+00 : f32
    %41 = vector.broadcast %cst_16 : f32 to vector<8x1xf32>
    %42 = tpu.concatenate %40, %41 in 1 : vector<8x17xf32>, vector<8x1xf32> -> vector<8x18xf32>
    %43 = vector.extract_strided_slice %39 {offsets = [8, 0], sizes = [8, 17], strides = [1, 1]} : vector<16x17xf32> to vector<8x17xf32>
    %cst_17 = arith.constant 0.000000e+00 : f32
    %44 = vector.broadcast %cst_17 : f32 to vector<8x1xf32>
    %45 = tpu.concatenate %44, %43 in 1 : vector<8x1xf32>, vector<8x17xf32> -> vector<8x18xf32>
    %46 = arith.addf %42, %45 : vector<8x18xf32>
    %47 = tpu.concatenate %30, %46 in 1 : vector<8x18xf32>, vector<8x18xf32> -> vector<8x36xf32>
    %cst_18 = arith.constant dense<0.000000e+00> : vector<8xf32>
    %48 = vector.multi_reduction <add>, %47, %cst_18 [1] : vector<8x36xf32> to vector<8xf32>
    %49 = vector.shape_cast %48 : vector<8xf32> to vector<8x1xf32>
    %cst_19 = arith.constant 0.027777778 : f32
    %50 = vector.broadcast %cst_19 : f32 to vector<8x1xf32>
    %51 = arith.mulf %49, %50 : vector<8x1xf32>
    %52 = arith.mulf %47, %47 : vector<8x36xf32>
    %cst_20 = arith.constant dense<0.000000e+00> : vector<8xf32>
    %53 = vector.multi_reduction <add>, %52, %cst_20 [1] : vector<8x36xf32> to vector<8xf32>
    %54 = vector.shape_cast %53 : vector<8xf32> to vector<8x1xf32>
    %cst_21 = arith.constant 0.027777778 : f32
    %55 = vector.broadcast %cst_21 : f32 to vector<8x1xf32>
    %56 = arith.mulf %54, %55 : vector<8x1xf32>
    %57 = arith.mulf %51, %51 : vector<8x1xf32>
    %58 = arith.subf %56, %57 : vector<8x1xf32>
    %cst_22 = arith.constant 0.000000e+00 : f32
    %59 = vector.broadcast %cst_22 : f32 to vector<8x1xf32>
    %60 = arith.maximumf %58, %59 : vector<8x1xf32>
    %cst_23 = arith.constant 9.99999974E-6 : f32
    %61 = vector.broadcast %cst_23 : f32 to vector<8x1xf32>
    %62 = arith.addf %60, %61 : vector<8x1xf32>
    %63 = math.rsqrt %62 : vector<8x1xf32>
    %c0_24 = arith.constant 0 : index
    %c0_25 = arith.constant 0 : index
    %64 = vector.load %arg4[%c0_24, %c0_25] : memref<8x1xf32, #tpu.memory_space<vmem>>, vector<8x1xf32>
    %65 = arith.mulf %63, %64 : vector<8x1xf32>
    %c0_26 = arith.constant 0 : index
    %c0_27 = arith.constant 0 : index
    %66 = vector.load %arg5[%c0_26, %c0_27] : memref<8x1xf32, #tpu.memory_space<vmem>>, vector<8x1xf32>
    %67 = arith.mulf %51, %65 : vector<8x1xf32>
    %68 = arith.subf %66, %67 : vector<8x1xf32>
    %69 = vector.broadcast %65 : vector<8x1xf32> to vector<8x36xf32>
    %70 = arith.mulf %47, %69 : vector<8x36xf32>
    %71 = vector.broadcast %68 : vector<8x1xf32> to vector<8x36xf32>
    %72 = arith.addf %70, %71 : vector<8x36xf32>
    %cst_28 = arith.constant 0.000000e+00 : f32
    %73 = vector.broadcast %cst_28 : f32 to vector<8x36xf32>
    %74 = arith.maximumf %72, %73 : vector<8x36xf32>
    %c0_29 = arith.constant 0 : index
    %c0_30 = arith.constant 0 : index
    %75 = vector.load %arg2[%c0_29, %c0_30] : memref<64x8xf32, #tpu.memory_space<vmem>>, vector<64x8xf32>
    %cst_31 = arith.constant dense<0.000000e+00> : vector<64x36xf32>
    %76 = tpu.matmul %75, %74, %cst_31 {dimension_numbers = #tpu.dot_dimension_numbers<[1], [0], [0], [1], [0, 0, 1, 1], [], []>} : vector<64x8xf32>, vector<8x36xf32>, vector<64x36xf32> -> vector<64x36xf32>
    %77 = tpu.iota {dimensions = array<i32: 0>} : vector<19x73xi32>
    %78 = tpu.iota {dimensions = array<i32: 1>} : vector<19x73xi32>
    %c4_i32 = arith.constant 4 : i32
    %79 = vector.broadcast %c4_i32 : i32 to vector<19x73xi32>
    %80 = arith.muli %77, %79 : vector<19x73xi32>
    %81 = arith.cmpi eq, %78, %80 : vector<19x73xi32>
    %cst_32 = arith.constant 1.000000e+00 : f32
    %cst_33 = arith.constant 0.000000e+00 : f32
    %82 = vector.broadcast %cst_32 : f32 to vector<19x73xf32>
    %83 = vector.broadcast %cst_33 : f32 to vector<19x73xf32>
    %84 = arith.select %81, %82, %83 : vector<19x73xi1>, vector<19x73xf32>
    %85 = vector.extract_strided_slice %76 {offsets = [0, 0], sizes = [64, 18], strides = [1, 1]} : vector<64x36xf32> to vector<64x18xf32>
    %86 = vector.extract_strided_slice %85 {offsets = [0, 0], sizes = [32, 18], strides = [1, 1]} : vector<64x18xf32> to vector<32x18xf32>
    %87 = vector.extract_strided_slice %85 {offsets = [32, 0], sizes = [32, 18], strides = [1, 1]} : vector<64x18xf32> to vector<32x18xf32>
    %cst_34 = arith.constant 0.000000e+00 : f32
    %88 = vector.broadcast %cst_34 : f32 to vector<32x1xf32>
    %89 = tpu.concatenate %86, %88 in 1 : vector<32x18xf32>, vector<32x1xf32> -> vector<32x19xf32>
    %cst_35 = arith.constant 0.000000e+00 : f32
    %90 = vector.broadcast %cst_35 : f32 to vector<32x1xf32>
    %91 = tpu.concatenate %90, %87 in 1 : vector<32x1xf32>, vector<32x18xf32> -> vector<32x19xf32>
    %92 = arith.addf %89, %91 : vector<32x19xf32>
    %cst_36 = arith.constant dense<0.000000e+00> : vector<32x73xf32>
    %93 = tpu.matmul %92, %84, %cst_36 {dimension_numbers = #tpu.dot_dimension_numbers<[1], [0], [0], [1], [0, 0, 1, 1], [], []>} : vector<32x19xf32>, vector<19x73xf32>, vector<32x73xf32> -> vector<32x73xf32>
    %94 = vector.extract_strided_slice %93 {offsets = [0, 0], sizes = [8, 73], strides = [1, 1]} : vector<32x73xf32> to vector<8x73xf32>
    %cst_37 = arith.constant 0.000000e+00 : f32
    %95 = vector.broadcast %cst_37 : f32 to vector<8x3xf32>
    %96 = tpu.concatenate %94, %95 in 1 : vector<8x73xf32>, vector<8x3xf32> -> vector<8x76xf32>
    %97 = vector.extract_strided_slice %93 {offsets = [8, 0], sizes = [8, 73], strides = [1, 1]} : vector<32x73xf32> to vector<8x73xf32>
    %cst_38 = arith.constant 0.000000e+00 : f32
    %98 = vector.broadcast %cst_38 : f32 to vector<8x1xf32>
    %cst_39 = arith.constant 0.000000e+00 : f32
    %99 = vector.broadcast %cst_39 : f32 to vector<8x2xf32>
    %100 = tpu.concatenate %98, %97, %99 in 1 : vector<8x1xf32>, vector<8x73xf32>, vector<8x2xf32> -> vector<8x76xf32>
    %101 = vector.extract_strided_slice %93 {offsets = [16, 0], sizes = [8, 73], strides = [1, 1]} : vector<32x73xf32> to vector<8x73xf32>
    %cst_40 = arith.constant 0.000000e+00 : f32
    %102 = vector.broadcast %cst_40 : f32 to vector<8x2xf32>
    %cst_41 = arith.constant 0.000000e+00 : f32
    %103 = vector.broadcast %cst_41 : f32 to vector<8x1xf32>
    %104 = tpu.concatenate %102, %101, %103 in 1 : vector<8x2xf32>, vector<8x73xf32>, vector<8x1xf32> -> vector<8x76xf32>
    %105 = vector.extract_strided_slice %93 {offsets = [24, 0], sizes = [8, 73], strides = [1, 1]} : vector<32x73xf32> to vector<8x73xf32>
    %cst_42 = arith.constant 0.000000e+00 : f32
    %106 = vector.broadcast %cst_42 : f32 to vector<8x3xf32>
    %107 = tpu.concatenate %106, %105 in 1 : vector<8x3xf32>, vector<8x73xf32> -> vector<8x76xf32>
    %108 = arith.addf %96, %100 : vector<8x76xf32>
    %109 = arith.addf %104, %107 : vector<8x76xf32>
    %110 = arith.addf %108, %109 : vector<8x76xf32>
    %111 = vector.extract_strided_slice %110 {offsets = [0, 1], sizes = [8, 74], strides = [1, 1]} : vector<8x76xf32> to vector<8x74xf32>
    %112 = vector.extract_strided_slice %76 {offsets = [0, 18], sizes = [64, 18], strides = [1, 1]} : vector<64x36xf32> to vector<64x18xf32>
    %113 = vector.extract_strided_slice %112 {offsets = [0, 0], sizes = [32, 18], strides = [1, 1]} : vector<64x18xf32> to vector<32x18xf32>
    %114 = vector.extract_strided_slice %112 {offsets = [32, 0], sizes = [32, 18], strides = [1, 1]} : vector<64x18xf32> to vector<32x18xf32>
    %cst_43 = arith.constant 0.000000e+00 : f32
    %115 = vector.broadcast %cst_43 : f32 to vector<32x1xf32>
    %116 = tpu.concatenate %113, %115 in 1 : vector<32x18xf32>, vector<32x1xf32> -> vector<32x19xf32>
    %cst_44 = arith.constant 0.000000e+00 : f32
    %117 = vector.broadcast %cst_44 : f32 to vector<32x1xf32>
    %118 = tpu.concatenate %117, %114 in 1 : vector<32x1xf32>, vector<32x18xf32> -> vector<32x19xf32>
    %119 = arith.addf %116, %118 : vector<32x19xf32>
    %cst_45 = arith.constant dense<0.000000e+00> : vector<32x73xf32>
    %120 = tpu.matmul %119, %84, %cst_45 {dimension_numbers = #tpu.dot_dimension_numbers<[1], [0], [0], [1], [0, 0, 1, 1], [], []>} : vector<32x19xf32>, vector<19x73xf32>, vector<32x73xf32> -> vector<32x73xf32>
    %121 = vector.extract_strided_slice %120 {offsets = [0, 0], sizes = [8, 73], strides = [1, 1]} : vector<32x73xf32> to vector<8x73xf32>
    %cst_46 = arith.constant 0.000000e+00 : f32
    %122 = vector.broadcast %cst_46 : f32 to vector<8x3xf32>
    %123 = tpu.concatenate %121, %122 in 1 : vector<8x73xf32>, vector<8x3xf32> -> vector<8x76xf32>
    %124 = vector.extract_strided_slice %120 {offsets = [8, 0], sizes = [8, 73], strides = [1, 1]} : vector<32x73xf32> to vector<8x73xf32>
    %cst_47 = arith.constant 0.000000e+00 : f32
    %125 = vector.broadcast %cst_47 : f32 to vector<8x1xf32>
    %cst_48 = arith.constant 0.000000e+00 : f32
    %126 = vector.broadcast %cst_48 : f32 to vector<8x2xf32>
    %127 = tpu.concatenate %125, %124, %126 in 1 : vector<8x1xf32>, vector<8x73xf32>, vector<8x2xf32> -> vector<8x76xf32>
    %128 = vector.extract_strided_slice %120 {offsets = [16, 0], sizes = [8, 73], strides = [1, 1]} : vector<32x73xf32> to vector<8x73xf32>
    %cst_49 = arith.constant 0.000000e+00 : f32
    %129 = vector.broadcast %cst_49 : f32 to vector<8x2xf32>
    %cst_50 = arith.constant 0.000000e+00 : f32
    %130 = vector.broadcast %cst_50 : f32 to vector<8x1xf32>
    %131 = tpu.concatenate %129, %128, %130 in 1 : vector<8x2xf32>, vector<8x73xf32>, vector<8x1xf32> -> vector<8x76xf32>
    %132 = vector.extract_strided_slice %120 {offsets = [24, 0], sizes = [8, 73], strides = [1, 1]} : vector<32x73xf32> to vector<8x73xf32>
    %cst_51 = arith.constant 0.000000e+00 : f32
    %133 = vector.broadcast %cst_51 : f32 to vector<8x3xf32>
    %134 = tpu.concatenate %133, %132 in 1 : vector<8x3xf32>, vector<8x73xf32> -> vector<8x76xf32>
    %135 = arith.addf %123, %127 : vector<8x76xf32>
    %136 = arith.addf %131, %134 : vector<8x76xf32>
    %137 = arith.addf %135, %136 : vector<8x76xf32>
    %138 = vector.extract_strided_slice %137 {offsets = [0, 1], sizes = [8, 74], strides = [1, 1]} : vector<8x76xf32> to vector<8x74xf32>
    %139 = tpu.concatenate %111, %138 in 1 : vector<8x74xf32>, vector<8x74xf32> -> vector<8x148xf32>
    %cst_52 = arith.constant dense<0.000000e+00> : vector<8xf32>
    %140 = vector.multi_reduction <add>, %139, %cst_52 [1] : vector<8x148xf32> to vector<8xf32>
    %141 = vector.shape_cast %140 : vector<8xf32> to vector<8x1xf32>
    %cst_53 = arith.constant 0.00675675692 : f32
    %142 = vector.broadcast %cst_53 : f32 to vector<8x1xf32>
    %143 = arith.mulf %141, %142 : vector<8x1xf32>
    %144 = arith.mulf %139, %139 : vector<8x148xf32>
    %cst_54 = arith.constant dense<0.000000e+00> : vector<8xf32>
    %145 = vector.multi_reduction <add>, %144, %cst_54 [1] : vector<8x148xf32> to vector<8xf32>
    %146 = vector.shape_cast %145 : vector<8xf32> to vector<8x1xf32>
    %cst_55 = arith.constant 0.00675675692 : f32
    %147 = vector.broadcast %cst_55 : f32 to vector<8x1xf32>
    %148 = arith.mulf %146, %147 : vector<8x1xf32>
    %149 = arith.mulf %143, %143 : vector<8x1xf32>
    %150 = arith.subf %148, %149 : vector<8x1xf32>
    %cst_56 = arith.constant 0.000000e+00 : f32
    %151 = vector.broadcast %cst_56 : f32 to vector<8x1xf32>
    %152 = arith.maximumf %150, %151 : vector<8x1xf32>
    %cst_57 = arith.constant 9.99999974E-6 : f32
    %153 = vector.broadcast %cst_57 : f32 to vector<8x1xf32>
    %154 = arith.addf %152, %153 : vector<8x1xf32>
    %155 = math.rsqrt %154 : vector<8x1xf32>
    %c0_58 = arith.constant 0 : index
    %c0_59 = arith.constant 0 : index
    %156 = vector.load %arg6[%c0_58, %c0_59] : memref<8x1xf32, #tpu.memory_space<vmem>>, vector<8x1xf32>
    %157 = arith.mulf %155, %156 : vector<8x1xf32>
    %c0_60 = arith.constant 0 : index
    %c0_61 = arith.constant 0 : index
    %158 = vector.load %arg7[%c0_60, %c0_61] : memref<8x1xf32, #tpu.memory_space<vmem>>, vector<8x1xf32>
    %159 = arith.mulf %143, %157 : vector<8x1xf32>
    %160 = arith.subf %158, %159 : vector<8x1xf32>
    %161 = vector.broadcast %157 : vector<8x1xf32> to vector<8x148xf32>
    %162 = arith.mulf %139, %161 : vector<8x148xf32>
    %163 = vector.broadcast %160 : vector<8x1xf32> to vector<8x148xf32>
    %164 = arith.addf %162, %163 : vector<8x148xf32>
    %cst_62 = arith.constant 0.000000e+00 : f32
    %165 = vector.broadcast %cst_62 : f32 to vector<8x148xf32>
    %166 = arith.maximumf %164, %165 : vector<8x148xf32>
    %c0_63 = arith.constant 0 : index
    %c0_64 = arith.constant 0 : index
    %167 = vector.load %arg3[%c0_63, %c0_64] : memref<128x8xf32, #tpu.memory_space<vmem>>, vector<128x8xf32>
    %cst_65 = arith.constant dense<0.000000e+00> : vector<128x148xf32>
    %168 = tpu.matmul %167, %166, %cst_65 {dimension_numbers = #tpu.dot_dimension_numbers<[1], [0], [0], [1], [0, 0, 1, 1], [], []>} : vector<128x8xf32>, vector<8x148xf32>, vector<128x148xf32> -> vector<128x148xf32>
    %169 = tpu.iota {dimensions = array<i32: 0>} : vector<75x593xi32>
    %170 = tpu.iota {dimensions = array<i32: 1>} : vector<75x593xi32>
    %c8_i32 = arith.constant 8 : i32
    %171 = vector.broadcast %c8_i32 : i32 to vector<75x593xi32>
    %172 = arith.muli %169, %171 : vector<75x593xi32>
    %173 = arith.cmpi eq, %170, %172 : vector<75x593xi32>
    %cst_66 = arith.constant 1.000000e+00 : f32
    %cst_67 = arith.constant 0.000000e+00 : f32
    %174 = vector.broadcast %cst_66 : f32 to vector<75x593xf32>
    %175 = vector.broadcast %cst_67 : f32 to vector<75x593xf32>
    %176 = arith.select %173, %174, %175 : vector<75x593xi1>, vector<75x593xf32>
    %177 = vector.extract_strided_slice %168 {offsets = [0, 0], sizes = [128, 74], strides = [1, 1]} : vector<128x148xf32> to vector<128x74xf32>
    %178 = vector.extract_strided_slice %177 {offsets = [0, 0], sizes = [64, 74], strides = [1, 1]} : vector<128x74xf32> to vector<64x74xf32>
    %179 = vector.extract_strided_slice %177 {offsets = [64, 0], sizes = [64, 74], strides = [1, 1]} : vector<128x74xf32> to vector<64x74xf32>
    %cst_68 = arith.constant 0.000000e+00 : f32
    %180 = vector.broadcast %cst_68 : f32 to vector<64x1xf32>
    %181 = tpu.concatenate %178, %180 in 1 : vector<64x74xf32>, vector<64x1xf32> -> vector<64x75xf32>
    %cst_69 = arith.constant 0.000000e+00 : f32
    %182 = vector.broadcast %cst_69 : f32 to vector<64x1xf32>
    %183 = tpu.concatenate %182, %179 in 1 : vector<64x1xf32>, vector<64x74xf32> -> vector<64x75xf32>
    %184 = arith.addf %181, %183 : vector<64x75xf32>
    %cst_70 = arith.constant dense<0.000000e+00> : vector<64x593xf32>
    %185 = tpu.matmul %184, %176, %cst_70 {dimension_numbers = #tpu.dot_dimension_numbers<[1], [0], [0], [1], [0, 0, 1, 1], [], []>} : vector<64x75xf32>, vector<75x593xf32>, vector<64x593xf32> -> vector<64x593xf32>
    %186 = vector.extract_strided_slice %185 {offsets = [0, 0], sizes = [8, 593], strides = [1, 1]} : vector<64x593xf32> to vector<8x593xf32>
    %cst_71 = arith.constant 0.000000e+00 : f32
    %187 = vector.broadcast %cst_71 : f32 to vector<8x7xf32>
    %188 = tpu.concatenate %186, %187 in 1 : vector<8x593xf32>, vector<8x7xf32> -> vector<8x600xf32>
    %189 = vector.extract_strided_slice %185 {offsets = [8, 0], sizes = [8, 593], strides = [1, 1]} : vector<64x593xf32> to vector<8x593xf32>
    %cst_72 = arith.constant 0.000000e+00 : f32
    %190 = vector.broadcast %cst_72 : f32 to vector<8x1xf32>
    %cst_73 = arith.constant 0.000000e+00 : f32
    %191 = vector.broadcast %cst_73 : f32 to vector<8x6xf32>
    %192 = tpu.concatenate %190, %189, %191 in 1 : vector<8x1xf32>, vector<8x593xf32>, vector<8x6xf32> -> vector<8x600xf32>
    %193 = vector.extract_strided_slice %185 {offsets = [16, 0], sizes = [8, 593], strides = [1, 1]} : vector<64x593xf32> to vector<8x593xf32>
    %cst_74 = arith.constant 0.000000e+00 : f32
    %194 = vector.broadcast %cst_74 : f32 to vector<8x2xf32>
    %cst_75 = arith.constant 0.000000e+00 : f32
    %195 = vector.broadcast %cst_75 : f32 to vector<8x5xf32>
    %196 = tpu.concatenate %194, %193, %195 in 1 : vector<8x2xf32>, vector<8x593xf32>, vector<8x5xf32> -> vector<8x600xf32>
    %197 = vector.extract_strided_slice %185 {offsets = [24, 0], sizes = [8, 593], strides = [1, 1]} : vector<64x593xf32> to vector<8x593xf32>
    %cst_76 = arith.constant 0.000000e+00 : f32
    %198 = vector.broadcast %cst_76 : f32 to vector<8x3xf32>
    %cst_77 = arith.constant 0.000000e+00 : f32
    %199 = vector.broadcast %cst_77 : f32 to vector<8x4xf32>
    %200 = tpu.concatenate %198, %197, %199 in 1 : vector<8x3xf32>, vector<8x593xf32>, vector<8x4xf32> -> vector<8x600xf32>
    %201 = vector.extract_strided_slice %185 {offsets = [32, 0], sizes = [8, 593], strides = [1, 1]} : vector<64x593xf32> to vector<8x593xf32>
    %cst_78 = arith.constant 0.000000e+00 : f32
    %202 = vector.broadcast %cst_78 : f32 to vector<8x4xf32>
    %cst_79 = arith.constant 0.000000e+00 : f32
    %203 = vector.broadcast %cst_79 : f32 to vector<8x3xf32>
    %204 = tpu.concatenate %202, %201, %203 in 1 : vector<8x4xf32>, vector<8x593xf32>, vector<8x3xf32> -> vector<8x600xf32>
    %205 = vector.extract_strided_slice %185 {offsets = [40, 0], sizes = [8, 593], strides = [1, 1]} : vector<64x593xf32> to vector<8x593xf32>
    %cst_80 = arith.constant 0.000000e+00 : f32
    %206 = vector.broadcast %cst_80 : f32 to vector<8x5xf32>
    %cst_81 = arith.constant 0.000000e+00 : f32
    %207 = vector.broadcast %cst_81 : f32 to vector<8x2xf32>
    %208 = tpu.concatenate %206, %205, %207 in 1 : vector<8x5xf32>, vector<8x593xf32>, vector<8x2xf32> -> vector<8x600xf32>
    %209 = vector.extract_strided_slice %185 {offsets = [48, 0], sizes = [8, 593], strides = [1, 1]} : vector<64x593xf32> to vector<8x593xf32>
    %cst_82 = arith.constant 0.000000e+00 : f32
    %210 = vector.broadcast %cst_82 : f32 to vector<8x6xf32>
    %cst_83 = arith.constant 0.000000e+00 : f32
    %211 = vector.broadcast %cst_83 : f32 to vector<8x1xf32>
    %212 = tpu.concatenate %210, %209, %211 in 1 : vector<8x6xf32>, vector<8x593xf32>, vector<8x1xf32> -> vector<8x600xf32>
    %213 = vector.extract_strided_slice %185 {offsets = [56, 0], sizes = [8, 593], strides = [1, 1]} : vector<64x593xf32> to vector<8x593xf32>
    %cst_84 = arith.constant 0.000000e+00 : f32
    %214 = vector.broadcast %cst_84 : f32 to vector<8x7xf32>
    %215 = tpu.concatenate %214, %213 in 1 : vector<8x7xf32>, vector<8x593xf32> -> vector<8x600xf32>
    %216 = arith.addf %188, %192 : vector<8x600xf32>
    %217 = arith.addf %196, %200 : vector<8x600xf32>
    %218 = arith.addf %204, %208 : vector<8x600xf32>
    %219 = arith.addf %212, %215 : vector<8x600xf32>
    %220 = arith.addf %216, %217 : vector<8x600xf32>
    %221 = arith.addf %218, %219 : vector<8x600xf32>
    %222 = arith.addf %220, %221 : vector<8x600xf32>
    %223 = vector.extract_strided_slice %168 {offsets = [0, 74], sizes = [128, 74], strides = [1, 1]} : vector<128x148xf32> to vector<128x74xf32>
    %224 = vector.extract_strided_slice %223 {offsets = [0, 0], sizes = [64, 74], strides = [1, 1]} : vector<128x74xf32> to vector<64x74xf32>
    %225 = vector.extract_strided_slice %223 {offsets = [64, 0], sizes = [64, 74], strides = [1, 1]} : vector<128x74xf32> to vector<64x74xf32>
    %cst_85 = arith.constant 0.000000e+00 : f32
    %226 = vector.broadcast %cst_85 : f32 to vector<64x1xf32>
    %227 = tpu.concatenate %224, %226 in 1 : vector<64x74xf32>, vector<64x1xf32> -> vector<64x75xf32>
    %cst_86 = arith.constant 0.000000e+00 : f32
    %228 = vector.broadcast %cst_86 : f32 to vector<64x1xf32>
    %229 = tpu.concatenate %228, %225 in 1 : vector<64x1xf32>, vector<64x74xf32> -> vector<64x75xf32>
    %230 = arith.addf %227, %229 : vector<64x75xf32>
    %cst_87 = arith.constant dense<0.000000e+00> : vector<64x593xf32>
    %231 = tpu.matmul %230, %176, %cst_87 {dimension_numbers = #tpu.dot_dimension_numbers<[1], [0], [0], [1], [0, 0, 1, 1], [], []>} : vector<64x75xf32>, vector<75x593xf32>, vector<64x593xf32> -> vector<64x593xf32>
    %232 = vector.extract_strided_slice %231 {offsets = [0, 0], sizes = [8, 593], strides = [1, 1]} : vector<64x593xf32> to vector<8x593xf32>
    %cst_88 = arith.constant 0.000000e+00 : f32
    %233 = vector.broadcast %cst_88 : f32 to vector<8x7xf32>
    %234 = tpu.concatenate %232, %233 in 1 : vector<8x593xf32>, vector<8x7xf32> -> vector<8x600xf32>
    %235 = vector.extract_strided_slice %231 {offsets = [8, 0], sizes = [8, 593], strides = [1, 1]} : vector<64x593xf32> to vector<8x593xf32>
    %cst_89 = arith.constant 0.000000e+00 : f32
    %236 = vector.broadcast %cst_89 : f32 to vector<8x1xf32>
    %cst_90 = arith.constant 0.000000e+00 : f32
    %237 = vector.broadcast %cst_90 : f32 to vector<8x6xf32>
    %238 = tpu.concatenate %236, %235, %237 in 1 : vector<8x1xf32>, vector<8x593xf32>, vector<8x6xf32> -> vector<8x600xf32>
    %239 = vector.extract_strided_slice %231 {offsets = [16, 0], sizes = [8, 593], strides = [1, 1]} : vector<64x593xf32> to vector<8x593xf32>
    %cst_91 = arith.constant 0.000000e+00 : f32
    %240 = vector.broadcast %cst_91 : f32 to vector<8x2xf32>
    %cst_92 = arith.constant 0.000000e+00 : f32
    %241 = vector.broadcast %cst_92 : f32 to vector<8x5xf32>
    %242 = tpu.concatenate %240, %239, %241 in 1 : vector<8x2xf32>, vector<8x593xf32>, vector<8x5xf32> -> vector<8x600xf32>
    %243 = vector.extract_strided_slice %231 {offsets = [24, 0], sizes = [8, 593], strides = [1, 1]} : vector<64x593xf32> to vector<8x593xf32>
    %cst_93 = arith.constant 0.000000e+00 : f32
    %244 = vector.broadcast %cst_93 : f32 to vector<8x3xf32>
    %cst_94 = arith.constant 0.000000e+00 : f32
    %245 = vector.broadcast %cst_94 : f32 to vector<8x4xf32>
    %246 = tpu.concatenate %244, %243, %245 in 1 : vector<8x3xf32>, vector<8x593xf32>, vector<8x4xf32> -> vector<8x600xf32>
    %247 = vector.extract_strided_slice %231 {offsets = [32, 0], sizes = [8, 593], strides = [1, 1]} : vector<64x593xf32> to vector<8x593xf32>
    %cst_95 = arith.constant 0.000000e+00 : f32
    %248 = vector.broadcast %cst_95 : f32 to vector<8x4xf32>
    %cst_96 = arith.constant 0.000000e+00 : f32
    %249 = vector.broadcast %cst_96 : f32 to vector<8x3xf32>
    %250 = tpu.concatenate %248, %247, %249 in 1 : vector<8x4xf32>, vector<8x593xf32>, vector<8x3xf32> -> vector<8x600xf32>
    %251 = vector.extract_strided_slice %231 {offsets = [40, 0], sizes = [8, 593], strides = [1, 1]} : vector<64x593xf32> to vector<8x593xf32>
    %cst_97 = arith.constant 0.000000e+00 : f32
    %252 = vector.broadcast %cst_97 : f32 to vector<8x5xf32>
    %cst_98 = arith.constant 0.000000e+00 : f32
    %253 = vector.broadcast %cst_98 : f32 to vector<8x2xf32>
    %254 = tpu.concatenate %252, %251, %253 in 1 : vector<8x5xf32>, vector<8x593xf32>, vector<8x2xf32> -> vector<8x600xf32>
    %255 = vector.extract_strided_slice %231 {offsets = [48, 0], sizes = [8, 593], strides = [1, 1]} : vector<64x593xf32> to vector<8x593xf32>
    %cst_99 = arith.constant 0.000000e+00 : f32
    %256 = vector.broadcast %cst_99 : f32 to vector<8x6xf32>
    %cst_100 = arith.constant 0.000000e+00 : f32
    %257 = vector.broadcast %cst_100 : f32 to vector<8x1xf32>
    %258 = tpu.concatenate %256, %255, %257 in 1 : vector<8x6xf32>, vector<8x593xf32>, vector<8x1xf32> -> vector<8x600xf32>
    %259 = vector.extract_strided_slice %231 {offsets = [56, 0], sizes = [8, 593], strides = [1, 1]} : vector<64x593xf32> to vector<8x593xf32>
    %cst_101 = arith.constant 0.000000e+00 : f32
    %260 = vector.broadcast %cst_101 : f32 to vector<8x7xf32>
    %261 = tpu.concatenate %260, %259 in 1 : vector<8x7xf32>, vector<8x593xf32> -> vector<8x600xf32>
    %262 = arith.addf %234, %238 : vector<8x600xf32>
    %263 = arith.addf %242, %246 : vector<8x600xf32>
    %264 = arith.addf %250, %254 : vector<8x600xf32>
    %265 = arith.addf %258, %261 : vector<8x600xf32>
    %266 = arith.addf %262, %263 : vector<8x600xf32>
    %267 = arith.addf %264, %265 : vector<8x600xf32>
    %268 = arith.addf %266, %267 : vector<8x600xf32>
    %269 = tpu.concatenate %222, %268 in 1 : vector<8x600xf32>, vector<8x600xf32> -> vector<8x1200xf32>
    %cst_102 = arith.constant dense<0.000000e+00> : vector<8xf32>
    %270 = vector.multi_reduction <add>, %269, %cst_102 [1] : vector<8x1200xf32> to vector<8xf32>
    %271 = vector.shape_cast %270 : vector<8xf32> to vector<8x1xf32>
    %cst_103 = arith.constant 8.33333353E-4 : f32
    %272 = vector.broadcast %cst_103 : f32 to vector<8x1xf32>
    %273 = arith.mulf %271, %272 : vector<8x1xf32>
    %274 = arith.mulf %269, %269 : vector<8x1200xf32>
    %cst_104 = arith.constant dense<0.000000e+00> : vector<8xf32>
    %275 = vector.multi_reduction <add>, %274, %cst_104 [1] : vector<8x1200xf32> to vector<8xf32>
    %276 = vector.shape_cast %275 : vector<8xf32> to vector<8x1xf32>
    %cst_105 = arith.constant 8.33333353E-4 : f32
    %277 = vector.broadcast %cst_105 : f32 to vector<8x1xf32>
    %278 = arith.mulf %276, %277 : vector<8x1xf32>
    %279 = arith.mulf %273, %273 : vector<8x1xf32>
    %280 = arith.subf %278, %279 : vector<8x1xf32>
    %cst_106 = arith.constant 0.000000e+00 : f32
    %281 = vector.broadcast %cst_106 : f32 to vector<8x1xf32>
    %282 = arith.maximumf %280, %281 : vector<8x1xf32>
    %cst_107 = arith.constant 9.99999974E-6 : f32
    %283 = vector.broadcast %cst_107 : f32 to vector<8x1xf32>
    %284 = arith.addf %282, %283 : vector<8x1xf32>
    %285 = math.rsqrt %284 : vector<8x1xf32>
    %c0_108 = arith.constant 0 : index
    %c0_109 = arith.constant 0 : index
    %286 = vector.load %arg8[%c0_108, %c0_109] : memref<8x1xf32, #tpu.memory_space<vmem>>, vector<8x1xf32>
    %287 = arith.mulf %285, %286 : vector<8x1xf32>
    %c0_110 = arith.constant 0 : index
    %c0_111 = arith.constant 0 : index
    %288 = vector.load %arg9[%c0_110, %c0_111] : memref<8x1xf32, #tpu.memory_space<vmem>>, vector<8x1xf32>
    %289 = arith.mulf %273, %287 : vector<8x1xf32>
    %290 = arith.subf %288, %289 : vector<8x1xf32>
    %291 = vector.broadcast %287 : vector<8x1xf32> to vector<8x1200xf32>
    %292 = arith.mulf %269, %291 : vector<8x1200xf32>
    %293 = vector.broadcast %290 : vector<8x1xf32> to vector<8x1200xf32>
    %294 = arith.addf %292, %293 : vector<8x1200xf32>
    %cst_112 = arith.constant 0.000000e+00 : f32
    %295 = vector.broadcast %cst_112 : f32 to vector<8x1200xf32>
    %296 = arith.maximumf %294, %295 : vector<8x1200xf32>
    %297 = vector.extract_strided_slice %296 {offsets = [0, 0], sizes = [8, 600], strides = [1, 1]} : vector<8x1200xf32> to vector<8x600xf32>
    %c0_113 = arith.constant 0 : index
    %c0_114 = arith.constant 0 : index
    %c0_115 = arith.constant 0 : index
    %298 = vector.load %arg10[%c0_113, %c0_114, %c0_115] : memref<2x8x600xf32, #tpu.memory_space<vmem>>, vector<1x8x600xf32>
    %299 = vector.shape_cast %298 : vector<1x8x600xf32> to vector<8x600xf32>
    %300 = vector.shape_cast %297 : vector<8x600xf32> to vector<1x8x600xf32>
    tpu.vector_store %arg10[%c0_113, %c0_114, %c0_115], %300 {strides = array<i32>} : memref<2x8x600xf32, #tpu.memory_space<vmem>>, vector<1x8x600xf32>,
    %301 = vector.extract_strided_slice %296 {offsets = [0, 600], sizes = [8, 600], strides = [1, 1]} : vector<8x1200xf32> to vector<8x600xf32>
    %c1_116 = arith.constant 1 : index
    %c0_117 = arith.constant 0 : index
    %c0_118 = arith.constant 0 : index
    %302 = vector.load %arg10[%c1_116, %c0_117, %c0_118] : memref<2x8x600xf32, #tpu.memory_space<vmem>>, vector<1x8x600xf32>
    %303 = vector.shape_cast %302 : vector<1x8x600xf32> to vector<8x600xf32>
    %304 = vector.shape_cast %301 : vector<8x600xf32> to vector<1x8x600xf32>
    tpu.vector_store %arg10[%c1_116, %c0_117, %c0_118], %304 {strides = array<i32>} : memref<2x8x600xf32, #tpu.memory_space<vmem>>, vector<1x8x600xf32>,
    return
  }
}

</mosaic_0001>

<bundles_post_ra>
// kernel: basic_conv_forward.1
= control target key start
LH: loop header
LB: loop body
LE: loop exit
PB: predicated region body
PF: predicated region fallthrough
CT: control target
= control target key end

     0   :  { %s3264_s15 = smov 8   ;;  %vm4915_vm0 = vcmask 31744   ;;  %s4904_s0 = inlined_call_operand.vmem [shape: f32[2,4,8], index: 0, kind: input, shape index: {}]   ;;  %s4905_s1 = inlined_call_operand.vmem [shape: f32[32,4], index: 1, kind: input, shape index: {}]   ;;  %s4906_s2 = inlined_call_operand.vmem [shape: f32[64,8], index: 2, kind: input, shape index: {}]   ;;  %s4907_s3 = inlined_call_operand.vmem [shape: f32[128,8], index: 3, kind: input, shape index: {}]   ;;  %s4908_s4 = inlined_call_operand.vmem [shape: f32[8,1], index: 4, kind: input, shape index: {}]   ;;  %s4909_s5 = inlined_call_operand.vmem [shape: f32[8,1], index: 5, kind: input, shape index: {}]   ;;  %s4910_s6 = inlined_call_operand.vmem [shape: f32[8,1], index: 6, kind: input, shape index: {}]   ;;  %s4911_s7 = inlined_call_operand.vmem [shape: f32[8,1], index: 7, kind: input, shape index: {}]   ;;  %s4912_s8 = inlined_call_operand.vmem [shape: f32[8,1], index: 8, kind: input, shape index: {}]   ;;  %s4913_s9 = inlined_call_operand.vmem [shape: f32[8,1], index: 9, kind: input, shape index: {}]   ;;  %s4914_s10 = inlined_call_operand.hbm [shape: f32[2,8,600], index: 10, kind: output, shape index: {}]  }
   0x1   :  { %v2814_v0 = vld [vmem:[%s4904_s0 + $0x4] sm:$0xf] }
   0x2   :  { %40 = vrot.lane.b32.xlu0 %v2814_v0, %s3264_s15  ;;  %v45_v1 = vld [vmem:[%s4905_s1] sm:$0xff] }
   0x3   :  { %3088 = vmatprep.mubr.msk.f32.mxu0 %vm4915_vm0, %v45_v1 }
   0x4   :  { %15 = vsyncpa [#allocation3], 0  ;;  %v36_v2 = vld [vmem:[%s4904_s0] sm:$0xf]  ;;  %vm43_vm1 = vcmask 64512   ;;  %vm62_vm2 = vcmask 1043456   ;;  %v151_v8 = vlaneseq }
   0x5   :  { %v46_v5 = vld [vmem:[%s4905_s1 + $0x8] sm:$0xff]  ;;  %v47_v6 = vld [vmem:[%s4905_s1 + $0x10] sm:$0xff]  ;;  %v48_v7 = vld [vmem:[%s4905_s1 + $0x18] sm:$0xff]  ;;  %vm184_vm3 = vcmask 1040384   ;;  %v3265_v13 = vmov 0.0   ;;  %v3266_v16 = vmov 1.0  }
   0x6   :  { %v3366_v9 = vshrl.u32 %v151_v8, 7  ;;  %v3371_v11 = vand.u32 127, %v151_v8  ;;  %s3267_s1 = smov 120   ;;  %s3268_s25 = smov 121   ;;  %vm172_vm6 = vcmask 7168   ;;  %vm177_vm7 = vcmask 72704  }
   0x7   :  { %s3269_s26 = smov 1   ;;  %vm263_vm8 = vcmask 138240   ;;  %s3270_s27 = smov 18   ;;  %vm383_vm9 = vcmask 146432   ;;  %vm385_vm10 = vcmask 293888   ;;  %v3271_v56 = vmov 0  }
   0x8   :  { %v3369_v10 = vadd.s32 8, %v3366_v9  ;;  %v156_v15 = vmul.u32 2, %v3366_v9  ;;  %3234 = vset.pattern.permute.xlu0 %v3271_v56  ;;  %3235 = vset.pattern.permute.xlu1 %v3271_v56  ;;  %v400_v1 = vld [vmem:[%s4908_s4] sm:$0xff]  ;;  %vm4945_vm12 = vcmask 1042432   ;;  %vm593_vm15 = vcmask 154624   ;;  %s3276_s28 = smov 127  }
   0x9   :  { %s3277_s29 = smov 73   ;;  %s3279_s18 = smov 55  }
   0xa   :  { %v157_v12 = vmul.u32 2, %v3369_v10  ;;  %vm158_vm5 = vcmp.eq.s32.totalorder %v3371_v11, %v156_v15  ;;  %s3280_s19 = smov 4   ;;  %s3281_s20 = smov 5  }
   0xb   :  { %s3282_s21 = smov 6   ;;  %s3283_s22 = smov 7  }
   0xc   :  { %vm159_vm4 = vcmp.eq.s32.totalorder %v3371_v11, %v157_v12 }
   0xd   :  { %v161_v14 = vsel %vm159_vm4, 1.0, %v3265_v13  ;;  %vm695_vm4 = vcmask 596992  }
   0xe   :  { %3101 = vmatprep.subr.msk.mxu1 %vm184_vm3, %v161_v14 }
   0xf   :  { %3102 = vmatpush3.msk.msra.mxu1 %vm184_vm3, %v161_v14 }
  0x10   :  { %3103 = vmatprep.subr.msk.mxu1 %vm158_vm5, %v3266_v16 }
  0x11   :  { %3104 = vmatpush3.msk.msra.mxu1 %vm158_vm5, %v3266_v16 }
  0x74   :  { %v41_v3 = vpop.permute.xlu0 %40 }
  0x75   :  { %v44_v4 = vsel %vm43_vm1, %v36_v2, %v41_v3 }
  0x76   :  { %3086 = vmatprep.subr.msk.mxu0 %vm62_vm2, %v44_v4 }
  0x77   :  { %3087 = vmatpush3.msk.msra.mxu0 %vm62_vm2, %v44_v4  ;;  %v402_v4 = vld [vmem:[%s4909_s5] sm:$0xff]  ;;  %vm4917_vm2 = vcmask 15360  }
  0x78   :  { %3089 = vmatmul.mubr.msk.f32.vlgmr.msra.gmra.mxu0 %vm4915_vm0, %v46_v5  ;;  %3094 = vmatprep.subr.msk.mxu0 %vm184_vm3, %v161_v14 }
  0x79   :  { %3091 = vmatprep.mubr.msk.f32.mxu0 %vm4915_vm0, %v47_v6  ;;  %3095 = vmatpush3.msk.msra.mxu0 %vm184_vm3, %v161_v14  ;;  %vm702_vm3 = vcmask 605184  }
  0x7a   :  { %3096 = vmatprep.subr.msk.mxu0 %vm158_vm5, %v3266_v16 }
  0x7b   :  { %3097 = vmatpush3.msk.msra.mxu0 %vm158_vm5, %v3266_v16  ;;  %vm710_vm5 = vcmask 613376  }
  0x7c   :  { %3092 = vmatmul.mubr.msk.f32.gmra.mxu0 %vm4915_vm0, %v48_v7  ;;  %v418_v7 = vld [vmem:[%s4906_s2] sm:$0xff] }
 0x138   :  { %v3090_v17 = vpop.f32.mrf.mxu0 }
 0x139   :  { %v163_v36 = vsel %vm43_vm1, %v3090_v17, 0.0 }
 0x13a   :  { %v132_v18 = vpop.f32.mrf.mxu0 }
 0x13b   :  { %273 = vrot.lane.b32.xlu0 %v132_v18, %s3267_s1  ;;  %v162_v34 = vsel %vm43_vm1, %v132_v18, 0.0  ;;  %v419_v18 = vld [vmem:[%s4906_s2 + $0x8] sm:$0xff] }
 0x13c   :  { %v3093_v19 = vpop.f32.mrf.mxu0 }
 0x13e   :  { %v142_v20 = vpop.f32.mrf.mxu0 }
 0x13f   :  { %283 = vrot.lane.b32.xlu0 %v3093_v19, %s3268_s25  ;;  %281 = vrot.lane.b32.xlu1 %v142_v20, %s3268_s25  ;;  %s3274_s25 = smov 2  }
 0x143   :  { %168 = vrot.lane.b32.xlu0 %v3093_v19, %s3269_s26  ;;  %275 = vrot.lane.b32.xlu1 %v3090_v17, %s3267_s1  ;;  %v420_v19 = vld [vmem:[%s4906_s2 + $0x10] sm:$0xff]  ;;  %s3273_s1 = smov 111  }
 0x147   :  { %166 = vrot.lane.b32.xlu1 %v142_v20, %s3269_s26  ;;  %v421_v20 = vld [vmem:[%s4906_s2 + $0x18] sm:$0xff] }
 0x1ad   :  { %v274_v21 = vpop.permute.xlu0 %273 }
 0x1ae   :  { %v279_v24 = vsel %vm43_vm1, %v274_v21, 0.0  ;;  %v422_v21 = vld [vmem:[%s4906_s2 + $0x20] sm:$0xff] }
 0x1b1   :  { %v284_v22 = vpop.permute.xlu0 %283  ;;  %v282_v23 = vpop.permute.xlu1 %281 }
 0x1b2   :  { %v287_v25 = vsel %vm172_vm6, 0.0, %v282_v23  ;;  %v288_v28 = vsel %vm172_vm6, 0.0, %v284_v22  ;;  %v423_v22 = vld [vmem:[%s4906_s2 + $0x28] sm:$0xff]  ;;  %v424_v23 = vld [vmem:[%s4906_s2 + $0x30] sm:$0xff] }
 0x1b3   :  { %v289_v26 = vadd.f32 %v287_v25, %v279_v24  ;;  %v425_v24 = vld [vmem:[%s4906_s2 + $0x38] sm:$0xff]  ;;  %v3441_v25 = vadd.s32 16, %v3366_v9  ;;  %s3272_s2 = smov 110  }
 0x1b5   :  { %3105 = vmatprep.mubr.msk.f32.mxu1 %vm177_vm7, %v289_v26  ;;  %v276_v27 = vpop.permute.xlu1 %275  ;;  %v169_v29 = vpop.permute.xlu0 %168  ;;  %v558_v26 = vmul.u32 4, %v3441_v25 }
 0x1b6   :  { %v280_v30 = vsel %vm43_vm1, %v276_v27, 0.0  ;;  %v174_v32 = vsel %vm172_vm6, 0.0, %v169_v29 }
 0x1b7   :  { %v290_v31 = vadd.f32 %v288_v28, %v280_v30  ;;  %v176_v38 = vadd.f32 %v174_v32, %v163_v36  ;;  %vm561_vm11 = vcmp.eq.s32.totalorder %v3371_v11, %v558_v26  ;;  %v557_v28 = vmul.u32 4, %v3369_v10 }
 0x1b8   :  { %v564_v27 = vsel %vm561_vm11, 1.0, %v3265_v13  ;;  %v556_v30 = vmul.u32 4, %v3366_v9 }
 0x1b9   :  { %3106 = vmatmul.mubr.msk.f32.vlgmr.msra.gmra.mxu1 %vm177_vm7, %v290_v31  ;;  %v167_v33 = vpop.permute.xlu1 %166  ;;  %3122 = vmatprep.subr.msk.mxu1 %vm4945_vm12, %v564_v27  ;;  %vm3450_vm13 = vcmp.eq.s32.totalorder %v3371_v11, %v557_v28 }
 0x1ba   :  { %v173_v35 = vsel %vm172_vm6, 0.0, %v167_v33  ;;  %3123 = vmatpush3.msk.msra.mxu1 %vm4945_vm12, %v564_v27  ;;  %vm3462_vm14 = vcmp.eq.s32.totalorder %v3371_v11, %v556_v30 }
 0x1bb   :  { %v175_v37 = vadd.f32 %v173_v35, %v162_v34  ;;  %3124 = vmatprep.subr.msk.mxu1 %vm3450_vm13, %v3266_v16 }
 0x1bc   :  { %3125 = vmatpush3.msk.msra.mxu1 %vm3450_vm13, %v3266_v16 }
 0x1bd   :  { %3098 = vmatprep.mubr.msk.f32.mxu0 %vm177_vm7, %v175_v37  ;;  %3126 = vmatprep.subr.msk.mxu1 %vm3462_vm14, %v3266_v16 }
 0x1be   :  { %3099 = vmatmul.mubr.msk.f32.vlgmr.msra.gmra.mxu0 %vm177_vm7, %v176_v38  ;;  %3127 = vmatpush3.msk.msra.mxu1 %vm3462_vm14, %v3266_v16  ;;  %vm4916_vm7 = vcmask 23552  }
 0x1bf   :  { %3110 = vmatprep.mubr.msk.f32.mxu0 %vm43_vm1, %v418_v7  ;;  %3134 = vmatprep.subr.msk.mxu1 %vm4945_vm12, %v564_v27 }
 0x279   :  { %v3107_v39 = vpop.f32.mrf.mxu1 }
 0x27a   :  { %374 = vrot.lane.b32.xlu1 %v3107_v39, %s3269_s26 }
 0x27b   :  { %v363_v41 = vpop.f32.mrf.mxu1 }
 0x27c   :  { %v372_v43 = vsel %vm263_vm8, %v363_v41, 0.0 }
 0x27e   :  { %v3100_v40 = vpop.f32.mrf.mxu0 }
 0x27f   :  { %266 = vrot.lane.b32.xlu0 %v3100_v40, %s3269_s26 }
 0x280   :  { %v254_v47 = vpop.f32.mrf.mxu0 }
 0x281   :  { %v264_v49 = vsel %vm263_vm8, %v254_v47, 0.0  ;;  %vm888_vm8 = vcmask 162816  }
 0x2ec   :  { %v375_v42 = vpop.permute.xlu1 %374 }
 0x2ed   :  { %v377_v44 = vsel %vm172_vm6, 0.0, %v375_v42 }
 0x2ee   :  { %v378_v45 = vadd.f32 %v377_v44, %v372_v43 }
 0x2f0   :  { %380 = vrot.lane.b32.xlu1 %v378_v45, %s3270_s27  ;;  %s3275_s27 = smov 3  }
 0x2f1   :  { %v267_v46 = vpop.permute.xlu0 %266 }
 0x2f2   :  { %v269_v48 = vsel %vm172_vm6, 0.0, %v267_v46 }
 0x2f3   :  { %v270_v50 = vadd.f32 %v269_v48, %v264_v49 }
 0x362   :  { %v381_v51 = vpop.permute.xlu1 %380 }
 0x363   :  { %v384_v52 = vsel %vm383_vm9, %v270_v50, %v381_v51 }
 0x364   :  { %v386_v53 = vsel %vm385_vm10, %v384_v52, 0.0  ;;  %v390_v54 = vmul.f32 %v384_v52, %v384_v52 }
 0x365   :  { %387 = vadd.xlane.f32.xlu0 %v386_v53 }
 0x366   :  { %v391_v55 = vsel %vm385_vm10, %v390_v54, 0.0 }
 0x367   :  { %392 = vadd.xlane.f32.xlu1 %v391_v55 }
 0x3ee   :  { %v388_v57 = vpop.xlane.xlu0 %387 }
 0x3ef   :  { %v389_v58 = vmul.f32 0.027777778, %v388_v57 }
 0x3f0   :  { %v393_v59 = vpop.xlane.xlu1 %392 }
 0x3f1   :  { %v395_v60 = vmul.f32 %v389_v58, %v389_v58  ;;  %v394_v61 = vmul.f32 0.027777778, %v393_v59 }
 0x3f3   :  { %v396_v62 = vsub.f32 %v394_v61, %v395_v60 }
 0x3f5   :  { %v397_v63 = vmax.f32 %v396_v62, 0.0 }
 0x3f7   :  { %v398_v0 = vadd.f32 1e-05, %v397_v63 }
 0x3f9   :  { %3236 = vrsqrt.f32 %v398_v0 }
 0x406   :  { %v3237_v2 = vpop.eup %3236 }
 0x407   :  { %v401_v3 = vmul.f32 %v3237_v2, %v400_v1 }
 0x409   :  { %407 = vperm.xlu0 %3234, %v401_v3   ;;  %v403_v5 = vmul.f32 %v401_v3, %v389_v58 }
 0x40b   :  { %v404_v6 = vsub.f32 %v402_v4, %v403_v5 }
 0x40d   :  { %413 = vperm.xlu1 %3235, %v404_v6  }
 0x484   :  { %v408_v8 = vpop.permute.xlu0 %407 }
 0x485   :  { %v410_v12 = vmul.f32 %v408_v8, %v384_v52 }
 0x488   :  { %v414_v14 = vpop.permute.xlu1 %413 }
 0x489   :  { %v416_v15 = vadd.f32 %v414_v14, %v410_v12 }
 0x48b   :  { %v417_v17 = vmax.f32 %v416_v15, 0.0 }
 0x48d   :  { %3108 = vmatprep.subr.mxu0 %v417_v17 }
 0x48e   :  { %3109 = vmatpush3.msra.mxu0 %v417_v17 }
 0x48f   :  { %3111 = vmatmul.mubr.msk.f32.vlgmr.msra.gmra.mxu0 %vm43_vm1, %v419_v18 }
 0x490   :  { %3113 = vmatprep.mubr.msk.f32.mxu0 %vm43_vm1, %v420_v19 }
 0x493   :  { %3114 = vmatmul.mubr.msk.f32.gmra.mxu0 %vm43_vm1, %v421_v20 }
 0x494   :  { %3116 = vmatprep.mubr.msk.f32.mxu0 %vm43_vm1, %v422_v21 }
 0x497   :  { %3117 = vmatmul.mubr.msk.f32.gmra.mxu0 %vm43_vm1, %v423_v22 }
 0x498   :  { %3119 = vmatprep.mubr.msk.f32.mxu0 %vm43_vm1, %v424_v23 }
 0x49b   :  { %3120 = vmatmul.mubr.msk.f32.gmra.mxu0 %vm43_vm1, %v425_v24 }
 0x49c   :  { %1055 = vmatprep.mubr.f32.mxu0 %v3265_v13 }
 0x54f   :  { %v3112_v31 = vpop.f32.mrf.mxu0 }
 0x550   :  { %727 = vrot.lane.b32.xlu0 %v3112_v31, %s3272_s2  ;;  %v566_v46 = vsel %vm383_vm9, %v3112_v31, 0.0 }
 0x551   :  { %v516_v33 = vpop.f32.mrf.mxu0 }
 0x552   :  { %725 = vrot.lane.b32.xlu1 %v516_v33, %s3272_s2  ;;  %v565_v44 = vsel %vm383_vm9, %v516_v33, 0.0 }
 0x553   :  { %v3115_v34 = vpop.f32.mrf.mxu0 }
 0x554   :  { %v568_v57 = vsel %vm383_vm9, %v3115_v34, 0.0 }
 0x555   :  { %v526_v35 = vpop.f32.mrf.mxu0 }
 0x556   :  { %729 = vrot.lane.b32.xlu0 %v526_v35, %s3272_s2  ;;  %v567_v54 = vsel %vm383_vm9, %v526_v35, 0.0 }
 0x557   :  { %v3118_v36 = vpop.f32.mrf.mxu0 }
 0x558   :  { %575 = vrot.lane.b32.xlu1 %v3118_v36, %s3269_s26 }
 0x559   :  { %v536_v37 = vpop.f32.mrf.mxu0 }
 0x55a   :  { %731 = vrot.lane.b32.xlu0 %v3115_v34, %s3272_s2 }
 0x55b   :  { %v3121_v38 = vpop.f32.mrf.mxu0 }
 0x55c   :  { %573 = vrot.lane.b32.xlu1 %v536_v37, %s3269_s26 }
 0x55d   :  { %v546_v39 = vpop.f32.mrf.mxu0 }
 0x560   :  { %741 = vrot.lane.b32.xlu1 %v536_v37, %s3273_s1 }
 0x564   :  { %579 = vrot.lane.b32.xlu1 %v3121_v38, %s3269_s26 }
 0x568   :  { %577 = vrot.lane.b32.xlu1 %v546_v39, %s3269_s26 }
 0x56c   :  { %743 = vrot.lane.b32.xlu1 %v3118_v36, %s3273_s1 }
 0x570   :  { %745 = vrot.lane.b32.xlu1 %v546_v39, %s3273_s1 }
 0x574   :  { %747 = vrot.lane.b32.xlu1 %v3121_v38, %s3273_s1 }
 0x5c2   :  { %v728_v51 = vpop.permute.xlu0 %727 }
 0x5c3   :  { %v738_v0 = vsel %vm383_vm9, %v728_v51, 0.0 }
 0x5c4   :  { %v726_v40 = vpop.permute.xlu1 %725 }
 0x5c5   :  { %v737_v59 = vsel %vm383_vm9, %v726_v40, 0.0 }
 0x5c8   :  { %v730_v61 = vpop.permute.xlu0 %729 }
 0x5c9   :  { %v739_v4 = vsel %vm383_vm9, %v730_v61, 0.0 }
 0x5ca   :  { %v576_v41 = vpop.permute.xlu1 %575 }
 0x5cb   :  { %v586_v42 = vsel %vm172_vm6, 0.0, %v576_v41 }
 0x5cc   :  { %v590_v48 = vadd.f32 %v586_v42, %v566_v46  ;;  %v732_v6 = vpop.permute.xlu0 %731 }
 0x5cd   :  { %v740_v12 = vsel %vm383_vm9, %v732_v6, 0.0  ;;  %v908_v6 = vld [vmem:[%s4911_s7] sm:$0xff] }
 0x5ce   :  { %v574_v43 = vpop.permute.xlu1 %573 }
 0x5cf   :  { %v585_v45 = vsel %vm172_vm6, 0.0, %v574_v43 }
 0x5d0   :  { %v589_v47 = vadd.f32 %v585_v45, %v565_v44 }
 0x5d2   :  { %3128 = vmatprep.mubr.msk.f32.mxu1 %vm593_vm15, %v589_v47  ;;  %v742_v49 = vpop.permute.xlu1 %741 }
 0x5d3   :  { %3129 = vmatmul.mubr.msk.f32.vlgmr.msra.gmra.mxu1 %vm593_vm15, %v590_v48  ;;  %v753_v55 = vsel %vm172_vm6, 0.0, %v742_v49 }
 0x5d4   :  { %3135 = vmatpush3.msk.msra.mxu1 %vm4945_vm12, %v564_v27  ;;  %v757_v62 = vadd.f32 %v753_v55, %v737_v59 }
 0x5d5   :  { %3136 = vmatprep.subr.msk.mxu1 %vm3450_vm13, %v3266_v16 }
 0x5d6   :  { %v580_v50 = vpop.permute.xlu1 %579  ;;  %3137 = vmatpush3.msk.msra.mxu1 %vm3450_vm13, %v3266_v16 }
 0x5d7   :  { %3138 = vmatprep.subr.msk.mxu1 %vm3462_vm14, %v3266_v16  ;;  %v588_v52 = vsel %vm172_vm6, 0.0, %v580_v50 }
 0x5d8   :  { %3139 = vmatpush3.msk.msra.mxu1 %vm3462_vm14, %v3266_v16  ;;  %v592_v60 = vadd.f32 %v588_v52, %v568_v57 }
 0x5da   :  { %v578_v53 = vpop.permute.xlu1 %577 }
 0x5db   :  { %v587_v56 = vsel %vm172_vm6, 0.0, %v578_v53 }
 0x5dc   :  { %v591_v58 = vadd.f32 %v587_v56, %v567_v54 }
 0x5de   :  { %3131 = vmatprep.mubr.msk.f32.mxu1 %vm593_vm15, %v591_v58  ;;  %v744_v63 = vpop.permute.xlu1 %743 }
 0x5df   :  { %v754_v1 = vsel %vm172_vm6, 0.0, %v744_v63  ;;  %3132 = vmatmul.mubr.msk.f32.gmra.mxu1 %vm593_vm15, %v592_v60 }
 0x5e0   :  { %v758_v2 = vadd.f32 %v754_v1, %v738_v0  ;;  %3140 = vmatprep.mubr.msk.f32.mxu1 %vm593_vm15, %v757_v62 }
 0x5e2   :  { %v746_v3 = vpop.permute.xlu1 %745 }
 0x5e3   :  { %v755_v5 = vsel %vm172_vm6, 0.0, %v746_v3  ;;  %3141 = vmatmul.mubr.msk.f32.vlgmr.msra.gmra.mxu1 %vm593_vm15, %v758_v2  ;;  %v906_v3 = vld [vmem:[%s4910_s6] sm:$0xff] }
 0x5e4   :  { %v759_v7 = vadd.f32 %v755_v5, %v739_v4 }
 0x5e6   :  { %3143 = vmatprep.mubr.msk.f32.mxu1 %vm593_vm15, %v759_v7  ;;  %v748_v8 = vpop.permute.xlu1 %747 }
 0x5e7   :  { %v756_v14 = vsel %vm172_vm6, 0.0, %v748_v8 }
 0x5e8   :  { %v760_v15 = vadd.f32 %v756_v14, %v740_v12 }
 0x5ea   :  { %3144 = vmatmul.mubr.msk.f32.gmra.mxu1 %vm593_vm15, %v760_v15 }
 0x5eb   :  { %1432 = vmatprep.mubr.f32.mxu1 %v3265_v13 }
 0x693   :  { %v3130_v17 = vpop.f32.mrf.mxu1 }
 0x694   :  { %698 = vrot.lane.b32.xlu0 %v3130_v17, %s3269_s26 }
 0x695   :  { %v676_v18 = vpop.f32.mrf.mxu1 }
 0x696   :  { %v696_v33 = vsel %vm695_vm4, %v676_v18, 0.0 }
 0x69f   :  { %v3133_v19 = vpop.f32.mrf.mxu1 }
 0x6a1   :  { %v686_v20 = vpop.f32.mrf.mxu1 }
 0x6a2   :  { %705 = vrot.lane.b32.xlu1 %v686_v20, %s3274_s25 }
 0x6a3   :  { %v3142_v21 = vpop.f32.mrf.mxu1 }
 0x6a4   :  { %860 = vrot.lane.b32.xlu0 %v3142_v21, %s3269_s26 }
 0x6a5   :  { %v839_v22 = vpop.f32.mrf.mxu1 }
 0x6a6   :  { %v858_v44 = vsel %vm695_vm4, %v839_v22, 0.0  ;;  %v927_v22 = vld [vmem:[%s4907_s3] sm:$0xff] }
 0x6a8   :  { %713 = vrot.lane.b32.xlu0 %v3133_v19, %s3275_s27 }
 0x6aa   :  { %v3145_v23 = vpop.f32.mrf.mxu1 }
 0x6ac   :  { %v849_v24 = vpop.f32.mrf.mxu1 }
 0x6ad   :  { %866 = vrot.lane.b32.xlu1 %v849_v24, %s3274_s25  ;;  %v929_v24 = vld [vmem:[%s4907_s3 + $0x10] sm:$0xff] }
 0x6b1   :  { %872 = vrot.lane.b32.xlu1 %v3145_v23, %s3275_s27  ;;  %v928_v23 = vld [vmem:[%s4907_s3 + $0x8] sm:$0xff] }
 0x706   :  { %v699_v26 = vpop.permute.xlu0 %698 }
 0x707   :  { %v701_v28 = vsel %vm172_vm6, 0.0, %v699_v26  ;;  %v930_v26 = vld [vmem:[%s4907_s3 + $0x18] sm:$0xff] }
 0x708   :  { %v703_v31 = vsel %vm702_vm3, %v701_v28, 0.0  ;;  %v932_v28 = vld [vmem:[%s4907_s3 + $0x28] sm:$0xff] }
 0x709   :  { %v718_v36 = vadd.f32 %v703_v31, %v696_v33  ;;  %v935_v31 = vld [vmem:[%s4907_s3 + $0x40] sm:$0xff]  ;;  %v937_v33 = vld [vmem:[%s4907_s3 + $0x50] sm:$0xff] }
 0x714   :  { %v706_v27 = vpop.permute.xlu1 %705 }
 0x715   :  { %v709_v30 = vsel %vm4917_vm2, 0.0, %v706_v27  ;;  %v931_v27 = vld [vmem:[%s4907_s3 + $0x20] sm:$0xff] }
 0x716   :  { %v861_v29 = vpop.permute.xlu0 %860  ;;  %v711_v34 = vsel %vm710_vm5, %v709_v30, 0.0  ;;  %v934_v30 = vld [vmem:[%s4907_s3 + $0x38] sm:$0xff] }
 0x717   :  { %v863_v39 = vsel %vm172_vm6, 0.0, %v861_v29  ;;  %v933_v29 = vld [vmem:[%s4907_s3 + $0x30] sm:$0xff] }
 0x718   :  { %v864_v42 = vsel %vm702_vm3, %v863_v39, 0.0  ;;  %v1158_v39 = vadd.s32 72, %v3366_v9 }
 0x719   :  { %v876_v47 = vadd.f32 %v864_v42, %v858_v44  ;;  %v1156_v42 = vadd.s32 56, %v3366_v9 }
 0x71a   :  { %v714_v32 = vpop.permute.xlu0 %713  ;;  %v3626_v44 = vmul.u32 8, %v1158_v39 }
 0x71b   :  { %v717_v35 = vsel %vm4916_vm7, 0.0, %v714_v32  ;;  %v936_v32 = vld [vmem:[%s4907_s3 + $0x48] sm:$0xff] }
 0x71c   :  { %v719_v37 = vadd.f32 %v717_v35, %v711_v34  ;;  %v938_v34 = vld [vmem:[%s4907_s3 + $0x58] sm:$0xff]  ;;  %v939_v35 = vld [vmem:[%s4907_s3 + $0x60] sm:$0xff]  ;;  %vm1218_vm9 = vcmp.eq.s32.totalorder %v3371_v11, %v3626_v44 }
 0x71e   :  { %v720_v38 = vadd.f32 %v719_v37, %v718_v36  ;;  %v940_v36 = vld [vmem:[%s4907_s3 + $0x68] sm:$0xff]  ;;  %v941_v37 = vld [vmem:[%s4907_s3 + $0x70] sm:$0xff] }
 0x71f   :  { %v867_v40 = vpop.permute.xlu1 %866 }
 0x720   :  { %880 = vrot.lane.b32.xlu0 %v720_v38, %s3276_s28  ;;  %v869_v41 = vsel %vm4917_vm2, 0.0, %v867_v40  ;;  %v942_v38 = vld [vmem:[%s4907_s3 + $0x78] sm:$0xff]  ;;  %v3621_v40 = vadd.s32 128, %v3371_v11  ;;  %s3278_s3 = smov 54  }
 0x721   :  { %v870_v45 = vsel %vm710_vm5, %v869_v41, 0.0  ;;  %v1157_v41 = vadd.s32 64, %v3366_v9 }
 0x723   :  { %v873_v43 = vpop.permute.xlu1 %872 }
 0x724   :  { %v875_v46 = vsel %vm4916_vm7, 0.0, %v873_v43  ;;  %v1155_v43 = vadd.s32 48, %v3366_v9 }
 0x725   :  { %v877_v48 = vadd.f32 %v875_v46, %v870_v45  ;;  %v3628_v45 = vmul.u32 8, %v1157_v41  ;;  %v3631_v46 = vadd.s32 512, %v3371_v11 }
 0x727   :  { %v878_v49 = vadd.f32 %v877_v48, %v876_v47  ;;  %v3635_v48 = vmul.u32 8, %v1156_v42  ;;  %vm4944_vm10 = vcmp.eq.s32.totalorder %v3621_v40, %v3628_v45  ;;  %vm4943_vm11 = vcmp.eq.s32.totalorder %v3371_v11, %v3628_v45 }
 0x728   :  { %vm1222_vm13 = vcmp.eq.s32.totalorder %v3631_v46, %v3626_v44  ;;  %vm4918_vm15 = vcmp.eq.s32.totalorder %v3631_v46, %v3628_v45 }
 0x729   :  { %884 = vrot.lane.b32.xlu1 %v878_v49, %s3277_s29  ;;  %v1154_v49 = vadd.s32 40, %v3366_v9  ;;  %vm4942_vm14 = vcmp.eq.s32.totalorder %v3621_v40, %v3635_v48  ;;  %vm4941_vm4 = vcmp.eq.s32.totalorder %v3371_v11, %v3635_v48 }
 0x792   :  { %v881_v50 = vpop.permute.xlu0 %880 }
 0x79b   :  { %v885_v51 = vpop.permute.xlu1 %884 }
 0x79c   :  { %v887_v52 = vsel %vm702_vm3, %v881_v50, %v885_v51  ;;  %v889_v53 = vsel %vm888_vm8, %v885_v51, 0.0  ;;  %v895_v54 = vmul.f32 %v885_v51, %v885_v51  ;;  %v1153_v50 = vadd.s32 32, %v3366_v9 }
 0x79d   :  { %v890_v55 = vadd.f32 %v889_v53, %v887_v52  ;;  %v894_v56 = vmul.f32 %v887_v52, %v887_v52  ;;  %v3649_v53 = vsel %vm1218_vm9, 1.0, %v3265_v13 }
 0x79e   :  { %v896_v57 = vsel %vm888_vm8, %v895_v54, 0.0  ;;  %v3653_v54 = vmul.u32 8, %v1155_v43 }
 0x79f   :  { %891 = vadd.xlane.f32.xlu0 %v890_v55  ;;  %v897_v58 = vadd.f32 %v896_v57, %v894_v56  ;;  %v1152_v55 = vadd.s32 24, %v3366_v9  ;;  %v3669_v57 = vsel %vm1222_vm13, 1.0, %v3265_v13 }
 0x7a0   :  { %vm4940_vm8 = vcmp.eq.s32.totalorder %v3621_v40, %v3653_v54  ;;  %vm4919_vm9 = vcmp.eq.s32.totalorder %v3371_v11, %v3653_v54  ;;  %vm4923_vm0 = vcmp.eq.s32.totalorder %v3631_v46, %v3653_v54 }
 0x7a1   :  { %898 = vadd.xlane.f32.xlu1 %v897_v58  ;;  %v3673_v58 = vmul.u32 8, %v1154_v49 }
 0x7a3   :  { %vm4921_vm13 = vcmp.eq.s32.totalorder %v3621_v40, %v3673_v58  ;;  %vm4922_vm7 = vcmp.eq.s32.totalorder %v3371_v11, %v3673_v58 }
 0x828   :  { %v892_v59 = vpop.xlane.xlu0 %891 }
 0x829   :  { %v893_v60 = vmul.f32 0.006756757, %v892_v59 }
 0x82a   :  { %v899_v61 = vpop.xlane.xlu1 %898 }
 0x82b   :  { %v901_v62 = vmul.f32 %v893_v60, %v893_v60  ;;  %v900_v63 = vmul.f32 0.006756757, %v899_v61 }
 0x82d   :  { %v902_v0 = vsub.f32 %v900_v63, %v901_v62  ;;  %v3721_v62 = vmul.u32 8, %v1152_v55  ;;  %v3734_v63 = vmul.u32 8, %v3441_v25 }
 0x82e   :  { %v3761_v25 = vmul.u32 8, %v3369_v10 }
 0x82f   :  { %v903_v1 = vmax.f32 %v902_v0, 0.0 }
 0x831   :  { %v904_v2 = vadd.f32 1e-05, %v903_v1 }
 0x833   :  { %3238 = vrsqrt.f32 %v904_v2 }
 0x840   :  { %v3239_v4 = vpop.eup %3238 }
 0x841   :  { %v907_v5 = vmul.f32 %v3239_v4, %v906_v3  ;;  %v3842_v4 = vmul.u32 8, %v3366_v9 }
 0x843   :  { %913 = vperm.xlu0 %3234, %v907_v5   ;;  %v909_v7 = vmul.f32 %v907_v5, %v893_v60  ;;  %v3695_v60 = vmul.u32 8, %v1153_v50 }
 0x845   :  { %v910_v8 = vsub.f32 %v908_v6, %v909_v7  ;;  %vm4924_vm2 = vcmp.eq.s32.totalorder %v3621_v40, %v3695_v60 }
 0x847   :  { %920 = vperm.xlu1 %3235, %v910_v8  }
 0x8be   :  { %v914_v12 = vpop.permute.xlu0 %913 }
 0x8bf   :  { %v916_v14 = vmul.f32 %v914_v12, %v887_v52  ;;  %v917_v15 = vmul.f32 %v914_v12, %v885_v51 }
 0x8c2   :  { %v921_v17 = vpop.permute.xlu1 %920 }
 0x8c3   :  { %v923_v18 = vadd.f32 %v921_v17, %v916_v14  ;;  %v924_v19 = vadd.f32 %v921_v17, %v917_v15  ;;  %v3909_v14 = vadd.s32 384, %v3371_v11 }
 0x8c5   :  { %v925_v20 = vmax.f32 %v923_v18, 0.0  ;;  %v926_v21 = vmax.f32 %v924_v19, 0.0 }
 0x8c7   :  { %1021 = vmatprep.subr.mxu0 %v926_v21 }
 0x8c8   :  { %1022 = vmatpush1.msra.mxu0 %v925_v20 }
 0x8c9   :  { %2850 = vmatmul.mubr.msk.f32.vlgmr.msra.gmra.mxu0 %vm43_vm1, %v927_v22  ;;  %3146 = vmatprep.subr.msk.mxu0 %vm4945_vm12, %v3669_v57 }
 0x8ca   :  { %1061 = vmatprep.mubr.f32.mxu0 %v3265_v13  ;;  %3147 = vmatpush3.msk.msra.mxu0 %vm4945_vm12, %v3669_v57 }
 0x8cb   :  { %3148 = vmatprep.subr.msk.mxu0 %vm4918_vm15, %v3266_v16 }
 0x8cc   :  { %3149 = vmatpush3.msk.msra.mxu0 %vm4918_vm15, %v3266_v16  ;;  %vm4926_vm15 = vcmp.eq.s32.totalorder %v3631_v46, %v3673_v58 }
 0x8cd   :  { %2851 = vmatmul.mubr.msk.f32.gmra.mxu0 %vm43_vm1, %v928_v23 }
 0x8ce   :  { %1067 = vmatprep.mubr.f32.mxu0 %v3265_v13 }
 0x8d1   :  { %2852 = vmatmul.mubr.msk.f32.gmra.mxu0 %vm43_vm1, %v929_v24 }
 0x8d2   :  { %1073 = vmatprep.mubr.f32.mxu0 %v3265_v13 }
 0x8d5   :  { %2853 = vmatmul.mubr.msk.f32.gmra.mxu0 %vm43_vm1, %v930_v26 }
 0x8d6   :  { %1079 = vmatprep.mubr.f32.mxu0 %v3265_v13 }
 0x8d9   :  { %2854 = vmatmul.mubr.msk.f32.gmra.mxu0 %vm43_vm1, %v931_v27 }
 0x8da   :  { %1085 = vmatprep.mubr.f32.mxu0 %v3265_v13 }
 0x8dd   :  { %2855 = vmatmul.mubr.msk.f32.gmra.mxu0 %vm43_vm1, %v932_v28 }
 0x8de   :  { %1091 = vmatprep.mubr.f32.mxu0 %v3265_v13 }
 0x8e1   :  { %2856 = vmatmul.mubr.msk.f32.gmra.mxu0 %vm43_vm1, %v933_v29 }
 0x8e2   :  { %1097 = vmatprep.mubr.f32.mxu0 %v3265_v13 }
 0x8e5   :  { %2857 = vmatmul.mubr.msk.f32.gmra.mxu0 %vm43_vm1, %v934_v30 }
 0x8e6   :  { %1103 = vmatprep.mubr.f32.mxu0 %v3265_v13 }
 0x8e9   :  { %2858 = vmatmul.mubr.msk.f32.gmra.mxu0 %vm43_vm1, %v935_v31 }
 0x8ea   :  { %1109 = vmatprep.mubr.f32.mxu0 %v3265_v13 }
 0x8ed   :  { %2859 = vmatmul.mubr.msk.f32.gmra.mxu0 %vm43_vm1, %v936_v32 }
 0x8ee   :  { %1115 = vmatprep.mubr.f32.mxu0 %v3265_v13 }
 0x8f1   :  { %2860 = vmatmul.mubr.msk.f32.gmra.mxu0 %vm43_vm1, %v937_v33 }
 0x8f2   :  { %1121 = vmatprep.mubr.f32.mxu0 %v3265_v13 }
 0x8f5   :  { %2861 = vmatmul.mubr.msk.f32.gmra.mxu0 %vm43_vm1, %v938_v34  ;;  %v3991_v34 = vadd.s32 256, %v3371_v11 }
 0x8f6   :  { %1127 = vmatprep.mubr.f32.mxu0 %v3265_v13 }
 0x8f9   :  { %2862 = vmatmul.mubr.msk.f32.gmra.mxu0 %vm43_vm1, %v939_v35 }
 0x8fa   :  { %1133 = vmatprep.mubr.f32.mxu0 %v3265_v13 }
 0x8fd   :  { %2863 = vmatmul.mubr.msk.f32.gmra.mxu0 %vm43_vm1, %v940_v36 }
 0x8fe   :  { %1139 = vmatprep.mubr.f32.mxu0 %v3265_v13 }
 0x901   :  { %2864 = vmatmul.mubr.msk.f32.gmra.mxu0 %vm43_vm1, %v941_v37 }
 0x902   :  { %1145 = vmatprep.mubr.f32.mxu0 %v3265_v13 }
 0x905   :  { %2865 = vmatmul.mubr.msk.f32.gmra.mxu0 %vm43_vm1, %v942_v38  ;;  %vm1219_vm1 = vcmp.eq.s32.totalorder %v3621_v40, %v3626_v44 }
 0x906   :  { %v3646_v52 = vsel %vm1219_vm1, 1.0, %v3265_v13  ;;  %vm4920_vm1 = vcmp.eq.s32.totalorder %v3631_v46, %v3635_v48 }
 0x907   :  { %2866 = vmatprep.subr.msk.mxu1 %vm4945_vm12, %v3646_v52  ;;  %3150 = vmatprep.subr.msk.mxu0 %vm4920_vm1, %v3266_v16 }
 0x908   :  { %2867 = vmatpush1.msk.msra.mxu1 %vm4945_vm12, %v3649_v53  ;;  %3151 = vmatpush3.msk.msra.mxu0 %vm4920_vm1, %v3266_v16  ;;  %vm4939_vm1 = vcmp.eq.s32.totalorder %v3621_v40, %v3721_v62 }
 0x909   :  { %2868 = vmatprep.subr.msk.mxu1 %vm4944_vm10, %v3266_v16  ;;  %3152 = vmatprep.subr.msk.mxu0 %vm4923_vm0, %v3266_v16  ;;  %vm1205_vm10 = vcmp.eq.s32.totalorder %v3991_v34, %v3653_v54 }
 0x90a   :  { %2869 = vmatpush1.msk.msra.mxu1 %vm4943_vm11, %v3266_v16  ;;  %3153 = vmatpush3.msk.msra.mxu0 %vm4923_vm0, %v3266_v16  ;;  %vm4937_vm0 = vcmp.eq.s32.totalorder %v3621_v40, %v3734_v63  ;;  %vm1215_vm11 = vcmp.eq.s32.totalorder %v3991_v34, %v3628_v45 }
 0x90b   :  { %2870 = vmatprep.subr.msk.mxu1 %vm4942_vm14, %v3266_v16  ;;  %3154 = vmatprep.subr.msk.mxu0 %vm4926_vm15, %v3266_v16  ;;  %vm1220_vm14 = vcmp.eq.s32.totalorder %v3991_v34, %v3626_v44 }
 0x90c   :  { %2871 = vmatpush1.msk.msra.mxu1 %vm4941_vm4, %v3266_v16  ;;  %3155 = vmatpush3.msk.msra.mxu0 %vm4926_vm15, %v3266_v16  ;;  %vm4930_vm15 = vcmp.eq.s32.totalorder %v3621_v40, %v3761_v25  ;;  %vm1176_vm4 = vcmp.eq.s32.totalorder %v3909_v14, %v3842_v4  ;;  %v1270_v39 = vsel %vm1220_vm14, 1.0, %v3265_v13  ;;  %vm1210_vm14 = vcmp.eq.s32.totalorder %v3991_v34, %v3635_v48 }
 0x90d   :  { %2872 = vmatprep.subr.msk.mxu1 %vm4940_vm8, %v3266_v16  ;;  %vm1181_vm8 = vcmp.eq.s32.totalorder %v3909_v14, %v3761_v25 }
 0x90e   :  { %2873 = vmatpush1.msk.msra.mxu1 %vm4919_vm9, %v3266_v16  ;;  %vm4925_vm9 = vcmp.eq.s32.totalorder %v3371_v11, %v3695_v60 }
 0x90f   :  { %2874 = vmatprep.subr.msk.mxu1 %vm4921_vm13, %v3266_v16  ;;  %vm4927_vm13 = vcmp.eq.s32.totalorder %v3631_v46, %v3695_v60 }
 0x910   :  { %2875 = vmatpush1.msk.msra.mxu1 %vm4922_vm7, %v3266_v16  ;;  %vm4938_vm7 = vcmp.eq.s32.totalorder %v3371_v11, %v3721_v62  ;;  %3156 = vmatprep.subr.msk.mxu0 %vm4927_vm13, %v3266_v16 }
 0x911   :  { %2876 = vmatprep.subr.msk.mxu1 %vm4924_vm2, %v3266_v16  ;;  %vm4928_vm2 = vcmp.eq.s32.totalorder %v3631_v46, %v3721_v62  ;;  %3157 = vmatpush3.msk.msra.mxu0 %vm4927_vm13, %v3266_v16  ;;  %vm4936_vm13 = vcmp.eq.s32.totalorder %v3371_v11, %v3761_v25 }
 0x912   :  { %2877 = vmatpush1.msk.msra.mxu1 %vm4925_vm9, %v3266_v16  ;;  %vm4929_vm9 = vcmp.eq.s32.totalorder %v3371_v11, %v3734_v63  ;;  %3158 = vmatprep.subr.msk.mxu0 %vm4928_vm2, %v3266_v16 }
 0x913   :  { %2878 = vmatprep.subr.msk.mxu1 %vm4939_vm1, %v3266_v16  ;;  %3159 = vmatpush3.msk.msra.mxu0 %vm4928_vm2, %v3266_v16  ;;  %vm4931_vm2 = vcmp.eq.s32.totalorder %v3621_v40, %v3842_v4  ;;  %vm1186_vm1 = vcmp.eq.s32.totalorder %v3909_v14, %v3734_v63 }
 0x914   :  { %2879 = vmatpush1.msk.msra.mxu1 %vm4938_vm7, %v3266_v16  ;;  %vm1191_vm7 = vcmp.eq.s32.totalorder %v3909_v14, %v3721_v62 }
 0x915   :  { %2880 = vmatprep.subr.msk.mxu1 %vm4937_vm0, %v3266_v16  ;;  %vm1196_vm0 = vcmp.eq.s32.totalorder %v3909_v14, %v3695_v60 }
 0x916   :  { %2881 = vmatpush1.msk.msra.mxu1 %vm4929_vm9, %v3266_v16  ;;  %vm4935_vm9 = vcmp.eq.s32.totalorder %v3631_v46, %v3734_v63 }
 0x917   :  { %2882 = vmatprep.subr.msk.mxu1 %vm4930_vm15, %v3266_v16  ;;  %3160 = vmatprep.subr.msk.mxu0 %vm4935_vm9, %v3266_v16  ;;  %vm4932_vm15 = vcmp.eq.s32.totalorder %v3371_v11, %v3842_v4 }
 0x918   :  { %2883 = vmatpush1.msk.msra.mxu1 %vm4936_vm13, %v3266_v16  ;;  %3161 = vmatpush3.msk.msra.mxu0 %vm4935_vm9, %v3266_v16  ;;  %vm1211_vm9 = vcmp.eq.s32.totalorder %v3909_v14, %v3635_v48  ;;  %vm1206_vm13 = vcmp.eq.s32.totalorder %v3909_v14, %v3653_v54 }
 0x919   :  { %2884 = vmatprep.subr.msk.mxu1 %vm4931_vm2, %v3266_v16  ;;  %vm4933_vm2 = vcmp.eq.s32.totalorder %v3631_v46, %v3761_v25 }
 0x91a   :  { %2885 = vmatpush1.msk.msra.mxu1 %vm4932_vm15, %v3266_v16  ;;  %3162 = vmatprep.subr.msk.mxu0 %vm4933_vm2, %v3266_v16  ;;  %vm4934_vm15 = vcmp.eq.s32.totalorder %v3631_v46, %v3842_v4 }
 0x91b   :  { %3163 = vmatpush3.msk.msra.mxu0 %vm4933_vm2, %v3266_v16  ;;  %vm1221_vm2 = vcmp.eq.s32.totalorder %v3909_v14, %v3626_v44 }
 0x91c   :  { %3164 = vmatprep.subr.msk.mxu0 %vm4934_vm15, %v3266_v16  ;;  %v1271_v18 = vsel %vm1221_vm2, 1.0, %v3265_v13  ;;  %vm1201_vm2 = vcmp.eq.s32.totalorder %v3909_v14, %v3673_v58 }
 0x91d   :  { %3165 = vmatpush3.msk.msra.mxu0 %vm4934_vm15, %v3266_v16  ;;  %2894 = vmatprep.subr.msk.mxu1 %vm4945_vm12, %v1271_v18  ;;  %vm1216_vm15 = vcmp.eq.s32.totalorder %v3909_v14, %v3628_v45 }
 0x91e   :  { %2968 = vmatprep.subr.msk.mxu0 %vm4945_vm12, %v1271_v18 }
 0x989   :  { %v3633_v47 = vpop.f32.mrf.mxu0 }
 0x98a   :  { %v1273_v36 = vsel %vm702_vm3, %v3633_v47, 0.0 }
 0x98b   :  { %v3643_v51 = vpop.f32.mrf.mxu0 }
 0x98d   :  { %v3662_v56 = vpop.f32.mrf.mxu0 }
 0x98e   :  { %v1274_v42 = vsel %vm702_vm3, %v3662_v56, 0.0 }
 0x98f   :  { %v3683_v59 = vpop.f32.mrf.mxu0 }
 0x991   :  { %v3707_v61 = vpop.f32.mrf.mxu0 }
 0x992   :  { %v1275_v49 = vsel %vm702_vm3, %v3707_v61, 0.0 }
 0x993   :  { %v3736_v0 = vpop.f32.mrf.mxu0 }
 0x995   :  { %v3763_v1 = vpop.f32.mrf.mxu0 }
 0x997   :  { %v3787_v10 = vpop.f32.mrf.mxu0 }
 0x999   :  { %v3811_v2 = vpop.f32.mrf.mxu0 }
 0x99b   :  { %v3831_v3 = vpop.f32.mrf.mxu0 }
 0x99d   :  { %v3850_v5 = vpop.f32.mrf.mxu0 }
 0x99f   :  { %v3870_v9 = vpop.f32.mrf.mxu0 }
 0x9a1   :  { %v3886_v6 = vpop.f32.mrf.mxu0 }
 0x9a3   :  { %v3898_v7 = vpop.f32.mrf.mxu0 }
 0x9a5   :  { %v3904_v8 = vpop.f32.mrf.mxu0 }
 0x9a7   :  { %v3906_v12 = vpop.f32.mrf.mxu0 }
 0x9a9   :  { %v1105_v15 = vpop.f32.mrf.mxu0 }
 0x9aa   :  { %1289 = vrot.lane.b32.xlu0 %v1105_v15, %s3269_s26 }
 0x9ab   :  { %v1107_v17 = vpop.f32.mrf.mxu0 }
 0x9ad   :  { %v1111_v19 = vpop.f32.mrf.mxu0 }
 0x9ae   :  { %1291 = vrot.lane.b32.xlu1 %v1111_v19, %s3269_s26 }
 0x9af   :  { %v1113_v20 = vpop.f32.mrf.mxu0 }
 0x9b1   :  { %v1117_v21 = vpop.f32.mrf.mxu0 }
 0x9b2   :  { %1293 = vrot.lane.b32.xlu0 %v1117_v21, %s3269_s26 }
 0x9b3   :  { %v1119_v22 = vpop.f32.mrf.mxu0 }
 0x9b5   :  { %v1123_v23 = vpop.f32.mrf.mxu0 }
 0x9b6   :  { %1295 = vrot.lane.b32.xlu1 %v1123_v23, %s3269_s26 }
 0x9b7   :  { %v1125_v24 = vpop.f32.mrf.mxu0 }
 0x9b9   :  { %v1129_v26 = vpop.f32.mrf.mxu0 }
 0x9ba   :  { %1297 = vrot.lane.b32.xlu0 %v1129_v26, %s3269_s26 }
 0x9bb   :  { %v1131_v27 = vpop.f32.mrf.mxu0 }
 0x9bd   :  { %v1135_v28 = vpop.f32.mrf.mxu0 }
 0x9be   :  { %1299 = vrot.lane.b32.xlu1 %v1135_v28, %s3269_s26 }
 0x9bf   :  { %v1137_v29 = vpop.f32.mrf.mxu0 }
 0x9c1   :  { %v1141_v30 = vpop.f32.mrf.mxu0 }
 0x9c2   :  { %1301 = vrot.lane.b32.xlu0 %v1141_v30, %s3269_s26 }
 0x9c3   :  { %v1143_v31 = vpop.f32.mrf.mxu0 }
 0x9c5   :  { %v1147_v32 = vpop.f32.mrf.mxu0 }
 0x9c6   :  { %1942 = vrot.lane.b32.xlu0 %v3633_v47, %s3278_s3  ;;  %1303 = vrot.lane.b32.xlu1 %v1147_v32, %s3269_s26 }
 0x9c7   :  { %v1149_v33 = vpop.f32.mrf.mxu0 }
 0x9ca   :  { %2007 = vrot.lane.b32.xlu0 %v1105_v15, %s3279_s18  ;;  %1944 = vrot.lane.b32.xlu1 %v3643_v51, %s3278_s3  ;;  %v1279_v15 = vsel %vm702_vm3, %v3886_v6, 0.0 }
 0x9ce   :  { %1946 = vrot.lane.b32.xlu0 %v3662_v56, %s3278_s3  ;;  %2009 = vrot.lane.b32.xlu1 %v1107_v17, %s3279_s18  ;;  %v1276_v56 = vsel %vm702_vm3, %v3763_v1, 0.0 }
 0x9d2   :  { %2011 = vrot.lane.b32.xlu0 %v1111_v19, %s3279_s18  ;;  %1948 = vrot.lane.b32.xlu1 %v3683_v59, %s3278_s3 }
 0x9d6   :  { %1950 = vrot.lane.b32.xlu0 %v3707_v61, %s3278_s3  ;;  %2013 = vrot.lane.b32.xlu1 %v1113_v20, %s3279_s18  ;;  %v1280_v20 = vsel %vm702_vm3, %v3904_v8, 0.0 }
 0x9da   :  { %2015 = vrot.lane.b32.xlu0 %v1117_v21, %s3279_s18  ;;  %1952 = vrot.lane.b32.xlu1 %v3736_v0, %s3278_s3 }
 0x9de   :  { %1954 = vrot.lane.b32.xlu0 %v3763_v1, %s3278_s3  ;;  %2017 = vrot.lane.b32.xlu1 %v1119_v22, %s3279_s18  ;;  %v1277_v1 = vsel %vm702_vm3, %v3811_v2, 0.0 }
 0x9e2   :  { %2019 = vrot.lane.b32.xlu0 %v1123_v23, %s3279_s18  ;;  %1956 = vrot.lane.b32.xlu1 %v3787_v10, %s3278_s3 }
 0x9e6   :  { %1958 = vrot.lane.b32.xlu0 %v3811_v2, %s3278_s3  ;;  %2021 = vrot.lane.b32.xlu1 %v1125_v24, %s3279_s18 }
 0x9ea   :  { %2023 = vrot.lane.b32.xlu0 %v1129_v26, %s3279_s18  ;;  %1960 = vrot.lane.b32.xlu1 %v3831_v3, %s3278_s3 }
 0x9ee   :  { %1962 = vrot.lane.b32.xlu0 %v3850_v5, %s3278_s3  ;;  %2025 = vrot.lane.b32.xlu1 %v1131_v27, %s3279_s18 }
 0x9f2   :  { %2027 = vrot.lane.b32.xlu0 %v1135_v28, %s3279_s18  ;;  %1964 = vrot.lane.b32.xlu1 %v3870_v9, %s3278_s3  ;;  %v1278_v9 = vsel %vm702_vm3, %v3850_v5, 0.0 }
 0x9f6   :  { %1966 = vrot.lane.b32.xlu0 %v3886_v6, %s3278_s3  ;;  %2029 = vrot.lane.b32.xlu1 %v1137_v29, %s3279_s18 }
 0x9fa   :  { %2031 = vrot.lane.b32.xlu0 %v1141_v30, %s3279_s18  ;;  %1968 = vrot.lane.b32.xlu1 %v3898_v7, %s3278_s3 }
 0x9fe   :  { %1970 = vrot.lane.b32.xlu0 %v3904_v8, %s3278_s3  ;;  %2033 = vrot.lane.b32.xlu1 %v1143_v31, %s3279_s18 }
 0xa02   :  { %2035 = vrot.lane.b32.xlu0 %v1147_v32, %s3279_s18  ;;  %1972 = vrot.lane.b32.xlu1 %v3906_v12, %s3278_s3 }
 0xa06   :  { %2037 = vrot.lane.b32.xlu1 %v1149_v33, %s3279_s18 }
 0xa1c   :  { %v1290_v35 = vpop.permute.xlu0 %1289 }
 0xa1d   :  { %v1313_v37 = vsel %vm172_vm6, 0.0, %v1290_v35 }
 0xa1e   :  { %v3998_v38 = vadd.f32 %v1313_v37, %v1273_v36 }
 0xa20   :  { %2886 = vmatmul.mubr.msk.f32.vlgmr.msra.gmra.mxu1 %vm710_vm5, %v3998_v38  ;;  %3166 = vmatprep.mubr.msk.f32.mxu0 %vm710_vm5, %v3998_v38  ;;  %v1292_v41 = vpop.permute.xlu1 %1291 }
 0xa21   :  { %v1314_v43 = vsel %vm172_vm6, 0.0, %v1292_v41  ;;  %1438 = vmatprep.mubr.f32.mxu1 %v3265_v13  ;;  %2895 = vmatpush1.msk.msra.mxu1 %vm4945_vm12, %v1270_v39 }
 0xa22   :  { %v4012_v44 = vadd.f32 %v1314_v43, %v1274_v42  ;;  %2896 = vmatprep.subr.msk.mxu1 %vm1216_vm15, %v3266_v16 }
 0xa23   :  { %2897 = vmatpush1.msk.msra.mxu1 %vm1215_vm11, %v3266_v16 }
 0xa24   :  { %2887 = vmatmul.mubr.msk.f32.gmra.mxu1 %vm710_vm5, %v4012_v44  ;;  %3167 = vmatmul.mubr.msk.f32.vlgmr.msra.gmra.mxu0 %vm710_vm5, %v4012_v44  ;;  %v1294_v47 = vpop.permute.xlu0 %1293 }
 0xa25   :  { %v1315_v50 = vsel %vm172_vm6, 0.0, %v1294_v47  ;;  %1444 = vmatprep.mubr.f32.mxu1 %v3265_v13  ;;  %2898 = vmatprep.subr.msk.mxu1 %vm1211_vm9, %v3266_v16 }
 0xa26   :  { %v4036_v51 = vadd.f32 %v1315_v50, %v1275_v49  ;;  %2899 = vmatpush1.msk.msra.mxu1 %vm1210_vm14, %v3266_v16  ;;  %2969 = vmatpush1.msk.msra.mxu0 %vm4945_vm12, %v1270_v39  ;;  %vm1200_vm12 = vcmp.eq.s32.totalorder %v3991_v34, %v3673_v58 }
 0xa27   :  { %2900 = vmatprep.subr.msk.mxu1 %vm1206_vm13, %v3266_v16  ;;  %2970 = vmatprep.subr.msk.mxu0 %vm1216_vm15, %v3266_v16  ;;  %vm1195_vm15 = vcmp.eq.s32.totalorder %v3991_v34, %v3695_v60 }
 0xa28   :  { %2888 = vmatmul.mubr.msk.f32.gmra.mxu1 %vm710_vm5, %v4036_v51  ;;  %3169 = vmatprep.mubr.msk.f32.mxu0 %vm710_vm5, %v4036_v51  ;;  %v1296_v55 = vpop.permute.xlu1 %1295 }
 0xa29   :  { %v1316_v59 = vsel %vm172_vm6, 0.0, %v1296_v55  ;;  %1450 = vmatprep.mubr.f32.mxu1 %v3265_v13  ;;  %2901 = vmatpush1.msk.msra.mxu1 %vm1205_vm10, %v3266_v16 }
 0xa2a   :  { %v4067_v61 = vadd.f32 %v1316_v59, %v1276_v56  ;;  %2902 = vmatprep.subr.msk.mxu1 %vm1201_vm2, %v3266_v16  ;;  %2971 = vmatpush1.msk.msra.mxu0 %vm1215_vm11, %v3266_v16  ;;  %vm1190_vm11 = vcmp.eq.s32.totalorder %v3991_v34, %v3721_v62 }
 0xa2b   :  { %2903 = vmatpush1.msk.msra.mxu1 %vm1200_vm12, %v3266_v16  ;;  %2972 = vmatprep.subr.msk.mxu0 %vm1211_vm9, %v3266_v16  ;;  %vm1185_vm9 = vcmp.eq.s32.totalorder %v3991_v34, %v3734_v63 }
 0xa2c   :  { %2889 = vmatmul.mubr.msk.f32.gmra.mxu1 %vm710_vm5, %v4067_v61  ;;  %3170 = vmatmul.mubr.msk.f32.gmra.mxu0 %vm710_vm5, %v4067_v61  ;;  %v1298_v0 = vpop.permute.xlu0 %1297 }
 0xa2d   :  { %v1317_v10 = vsel %vm172_vm6, 0.0, %v1298_v0  ;;  %1456 = vmatprep.mubr.f32.mxu1 %v3265_v13  ;;  %2904 = vmatprep.subr.msk.mxu1 %vm1196_vm0, %v3266_v16 }
 0xa2e   :  { %v4099_v3 = vadd.f32 %v1317_v10, %v1277_v1  ;;  %2973 = vmatpush1.msk.msra.mxu0 %vm1210_vm14, %v3266_v16  ;;  %2905 = vmatpush1.msk.msra.mxu1 %vm1195_vm15, %v3266_v16  ;;  %vm4955_vm14 = vcmp.eq.s32.totalorder %v3371_v11, %v3635_v48 }
 0xa2f   :  { %2974 = vmatprep.subr.msk.mxu0 %vm1206_vm13, %v3266_v16  ;;  %2906 = vmatprep.subr.msk.mxu1 %vm1191_vm7, %v3266_v16  ;;  %vm4953_vm13 = vcmp.eq.s32.totalorder %v3371_v11, %v3628_v45 }
 0xa30   :  { %2890 = vmatmul.mubr.msk.f32.gmra.mxu1 %vm710_vm5, %v4099_v3  ;;  %3172 = vmatprep.mubr.msk.f32.mxu0 %vm710_vm5, %v4099_v3  ;;  %v1300_v2 = vpop.permute.xlu1 %1299 }
 0xa31   :  { %v1318_v7 = vsel %vm172_vm6, 0.0, %v1300_v2  ;;  %1462 = vmatprep.mubr.f32.mxu1 %v3265_v13  ;;  %2975 = vmatpush1.msk.msra.mxu0 %vm1205_vm10, %v3266_v16  ;;  %vm1180_vm10 = vcmp.eq.s32.totalorder %v3991_v34, %v3761_v25 }
 0xa32   :  { %v4131_v12 = vadd.f32 %v1318_v7, %v1278_v9  ;;  %2907 = vmatpush1.msk.msra.mxu1 %vm1190_vm11, %v3266_v16  ;;  %2976 = vmatprep.subr.msk.mxu0 %vm1201_vm2, %v3266_v16  ;;  %vm4954_vm2 = vcmp.eq.s32.totalorder %v3621_v40, %v3635_v48 }
 0xa33   :  { %2908 = vmatprep.subr.msk.mxu1 %vm1186_vm1, %v3266_v16  ;;  %2977 = vmatpush1.msk.msra.mxu0 %vm1200_vm12, %v3266_v16  ;;  %vm1974_vm12 = vcmask 441344  }
 0xa34   :  { %2891 = vmatmul.mubr.msk.f32.gmra.mxu1 %vm710_vm5, %v4131_v12  ;;  %3173 = vmatmul.mubr.msk.f32.gmra.mxu0 %vm710_vm5, %v4131_v12  ;;  %v1302_v5 = vpop.permute.xlu0 %1301 }
 0xa35   :  { %v1319_v17 = vsel %vm172_vm6, 0.0, %v1302_v5  ;;  %1468 = vmatprep.mubr.f32.mxu1 %v3265_v13  ;;  %2909 = vmatpush1.msk.msra.mxu1 %vm1185_vm9, %v3266_v16 }
 0xa36   :  { %v4165_v18 = vadd.f32 %v1319_v17, %v1279_v15  ;;  %2978 = vmatprep.subr.msk.mxu0 %vm1196_vm0, %v3266_v16  ;;  %2910 = vmatprep.subr.msk.mxu1 %vm1181_vm8, %v3266_v16  ;;  %vm1175_vm0 = vcmp.eq.s32.totalorder %v3991_v34, %v3842_v4 }
 0xa37   :  { %2979 = vmatpush1.msk.msra.mxu0 %vm1195_vm15, %v3266_v16  ;;  %2911 = vmatpush1.msk.msra.mxu1 %vm1180_vm10, %v3266_v16  ;;  %vm4956_vm15 = vcmp.eq.s32.totalorder %v3621_v40, %v3653_v54 }
 0xa38   :  { %2892 = vmatmul.mubr.msk.f32.gmra.mxu1 %vm710_vm5, %v4165_v18  ;;  %3175 = vmatprep.mubr.msk.f32.mxu0 %vm710_vm5, %v4165_v18  ;;  %v1943_v6 = vpop.permute.xlu0 %1942  ;;  %v1304_v19 = vpop.permute.xlu1 %1303 }
 0xa39   :  { %v1320_v21 = vsel %vm172_vm6, 0.0, %v1304_v19  ;;  %1474 = vmatprep.mubr.f32.mxu1 %v3265_v13  ;;  %2980 = vmatprep.subr.msk.mxu0 %vm1191_vm7, %v3266_v16  ;;  %vm2039_vm7 = vcmask 449536  }
 0xa3a   :  { %v4197_v22 = vadd.f32 %v1320_v21, %v1280_v20  ;;  %2912 = vmatprep.subr.msk.mxu1 %vm1176_vm4, %v3266_v16  ;;  %2981 = vmatpush1.msk.msra.mxu0 %vm1190_vm11, %v3266_v16  ;;  %vm4957_vm11 = vcmp.eq.s32.totalorder %v3371_v11, %v3653_v54 }
 0xa3b   :  { %2913 = vmatpush1.msk.msra.mxu1 %vm1175_vm0, %v3266_v16  ;;  %2982 = vmatprep.subr.msk.mxu0 %vm1186_vm1, %v3266_v16  ;;  %vm4950_vm1 = vcmask 1042432  }
 0xa3c   :  { %v2008_v8 = vpop.permute.xlu0 %2007  ;;  %2893 = vmatmul.mubr.msk.f32.gmra.mxu1 %vm710_vm5, %v4197_v22  ;;  %3176 = vmatmul.mubr.msk.f32.gmra.mxu0 %vm710_vm5, %v4197_v22  ;;  %v1945_v23 = vpop.permute.xlu1 %1944 }
 0xa3d   :  { %1545 = vmatprep.mubr.f32.mxu1 %v3265_v13  ;;  %2983 = vmatpush1.msk.msra.mxu0 %vm1185_vm9, %v3266_v16  ;;  %v1975_v24 = vsel %vm1974_vm12, %v1943_v6, %v1945_v23  ;;  %vm4958_vm9 = vcmp.eq.s32.totalorder %v3621_v40, %v3673_v58 }
 0xa3e   :  { %2984 = vmatprep.subr.msk.mxu0 %vm1181_vm8, %v3266_v16  ;;  %2273 = vmatprep.mubr.f32.mxu0 %v3265_v13  ;;  %vm4951_vm8 = vmmov %vm4950_vm1 }
 0xa3f   :  { %2985 = vmatpush1.msk.msra.mxu0 %vm1180_vm10, %v3266_v16  ;;  %2940 = vmatprep.subr.msk.mxu1 %vm4950_vm1, %v3646_v52  ;;  %v1991_v52 = vsel %vm702_vm3, %v1975_v24, 0.0  ;;  %vm4959_vm10 = vcmp.eq.s32.totalorder %v3371_v11, %v3673_v58  ;;  %vm4961_vm1 = vcmp.eq.s32.totalorder %v3371_v11, %v3695_v60 }
 0xa40   :  { %v1947_v26 = vpop.permute.xlu0 %1946  ;;  %2914 = vmatmul.mubr.msk.f32.vlgmr.msra.gmra.mxu1 %vm710_vm5, %v3998_v38  ;;  %v2010_v27 = vpop.permute.xlu1 %2009  ;;  %2986 = vmatprep.subr.msk.mxu0 %vm1176_vm4, %v3266_v16  ;;  %vm4952_vm4 = vcmp.eq.s32.totalorder %v3621_v40, %v3628_v45 }
 0xa41   :  { %v2040_v28 = vsel %vm2039_vm7, %v2008_v8, %v2010_v27  ;;  %1551 = vmatprep.mubr.f32.mxu1 %v3265_v13  ;;  %2987 = vmatpush1.msk.msra.mxu0 %vm1175_vm0, %v3266_v16  ;;  %vm4960_vm0 = vcmp.eq.s32.totalorder %v3621_v40, %v3695_v60 }
 0xa42   :  { %v2056_v29 = vsel %vm172_vm6, 0.0, %v2040_v28  ;;  %2941 = vmatpush1.msk.msra.mxu1 %vm4951_vm8, %v3649_v53  ;;  %vm4962_vm8 = vcmp.eq.s32.totalorder %v3621_v40, %v3721_v62 }
 0xa43   :  { %v4252_v30 = vadd.f32 %v2056_v29, %v1991_v52  ;;  %2942 = vmatprep.subr.msk.mxu1 %vm4952_vm4, %v3266_v16  ;;  %vm4963_vm4 = vcmp.eq.s32.totalorder %v3371_v11, %v3721_v62 }
 0xa44   :  { %v2012_v14 = vpop.permute.xlu0 %2011  ;;  %2915 = vmatmul.mubr.msk.f32.gmra.mxu1 %vm710_vm5, %v4012_v44  ;;  %v1949_v31 = vpop.permute.xlu1 %1948 }
 0xa45   :  { %2988 = vmatmul.mubr.msk.f32.vlgmr.msra.gmra.mxu0 %vm710_vm5, %v4252_v30  ;;  %1557 = vmatprep.mubr.f32.mxu1 %v3265_v13  ;;  %v1976_v53 = vsel %vm1974_vm12, %v1947_v26, %v1949_v31 }
 0xa46   :  { %2279 = vmatprep.mubr.f32.mxu0 %v3265_v13  ;;  %2943 = vmatpush1.msk.msra.mxu1 %vm4953_vm13, %v3266_v16  ;;  %v1992_v35 = vsel %vm702_vm3, %v1976_v53, 0.0  ;;  %vm4964_vm13 = vcmp.eq.s32.totalorder %v3621_v40, %v3734_v63 }
 0xa47   :  { %2944 = vmatprep.subr.msk.mxu1 %vm4954_vm2, %v3266_v16  ;;  %vm4965_vm2 = vcmp.eq.s32.totalorder %v3371_v11, %v3734_v63 }
 0xa48   :  { %v1951_v32 = vpop.permute.xlu0 %1950  ;;  %2916 = vmatmul.mubr.msk.f32.gmra.mxu1 %vm710_vm5, %v4036_v51  ;;  %v2014_v33 = vpop.permute.xlu1 %2013 }
 0xa49   :  { %v2041_v34 = vsel %vm2039_vm7, %v2012_v14, %v2014_v33  ;;  %1563 = vmatprep.mubr.f32.mxu1 %v3265_v13  ;;  %2945 = vmatpush1.msk.msra.mxu1 %vm4955_vm14, %v3266_v16  ;;  %vm4966_vm14 = vcmp.eq.s32.totalorder %v3621_v40, %v3761_v25 }
 0xa4a   :  { %v2057_v36 = vsel %vm172_vm6, 0.0, %v2041_v34  ;;  %2946 = vmatprep.subr.msk.mxu1 %vm4956_vm15, %v3266_v16  ;;  %vm4967_vm15 = vcmp.eq.s32.totalorder %v3371_v11, %v3761_v25 }
 0xa4b   :  { %v4287_v37 = vadd.f32 %v2057_v36, %v1992_v35  ;;  %2947 = vmatpush1.msk.msra.mxu1 %vm4957_vm11, %v3266_v16  ;;  %vm4968_vm11 = vcmp.eq.s32.totalorder %v3621_v40, %v3842_v4 }
 0xa4c   :  { %v2016_v38 = vpop.permute.xlu0 %2015  ;;  %2917 = vmatmul.mubr.msk.f32.gmra.mxu1 %vm710_vm5, %v4067_v61  ;;  %v1953_v39 = vpop.permute.xlu1 %1952  ;;  %2948 = vmatprep.subr.msk.mxu1 %vm4958_vm9, %v3266_v16  ;;  %vm4969_vm9 = vcmp.eq.s32.totalorder %v3371_v11, %v3842_v4 }
 0xa4d   :  { %2989 = vmatmul.mubr.msk.f32.gmra.mxu0 %vm710_vm5, %v4287_v37  ;;  %1569 = vmatprep.mubr.f32.mxu1 %v3265_v13  ;;  %v1977_v41 = vsel %vm1974_vm12, %v1951_v32, %v1953_v39 }
 0xa4e   :  { %2285 = vmatprep.mubr.f32.mxu0 %v3265_v13  ;;  %2949 = vmatpush1.msk.msra.mxu1 %vm4959_vm10, %v3266_v16  ;;  %v1993_v47 = vsel %vm702_vm3, %v1977_v41, 0.0  ;;  %vm4970_vm10 = vcmask 1042432  }
 0xa4f   :  { %2950 = vmatprep.subr.msk.mxu1 %vm4960_vm0, %v3266_v16  ;;  %vm4971_vm0 = vmmov %vm4970_vm10 }
 0xa50   :  { %v1955_v42 = vpop.permute.xlu0 %1954  ;;  %2918 = vmatmul.mubr.msk.f32.gmra.mxu1 %vm710_vm5, %v4099_v3  ;;  %v2018_v43 = vpop.permute.xlu1 %2017 }
 0xa51   :  { %v2042_v44 = vsel %vm2039_vm7, %v2016_v38, %v2018_v43  ;;  %1575 = vmatprep.mubr.f32.mxu1 %v3265_v13  ;;  %2951 = vmatpush1.msk.msra.mxu1 %vm4961_vm1, %v3266_v16  ;;  %vm4972_vm1 = vcmp.eq.s32.totalorder %v3631_v46, %v3628_v45 }
 0xa52   :  { %v2058_v49 = vsel %vm172_vm6, 0.0, %v2042_v44  ;;  %2952 = vmatprep.subr.msk.mxu1 %vm4962_vm8, %v3266_v16  ;;  %vm4973_vm8 = vmmov %vm4972_vm1 }
 0xa53   :  { %v4326_v50 = vadd.f32 %v2058_v49, %v1993_v47  ;;  %2953 = vmatpush1.msk.msra.mxu1 %vm4963_vm4, %v3266_v16  ;;  %vm4974_vm4 = vcmp.eq.s32.totalorder %v3631_v46, %v3635_v48 }
 0xa54   :  { %v2020_v51 = vpop.permute.xlu0 %2019  ;;  %2919 = vmatmul.mubr.msk.f32.gmra.mxu1 %vm710_vm5, %v4131_v12  ;;  %v1957_v55 = vpop.permute.xlu1 %1956  ;;  %2954 = vmatprep.subr.msk.mxu1 %vm4964_vm13, %v3266_v16  ;;  %vm4975_vm13 = vmmov %vm4974_vm4 }
 0xa55   :  { %2990 = vmatmul.mubr.msk.f32.gmra.mxu0 %vm710_vm5, %v4326_v50  ;;  %1581 = vmatprep.mubr.f32.mxu1 %v3265_v13  ;;  %v1978_v56 = vsel %vm1974_vm12, %v1955_v42, %v1957_v55 }
 0xa56   :  { %2955 = vmatpush1.msk.msra.mxu1 %vm4965_vm2, %v3266_v16  ;;  %2291 = vmatprep.mubr.f32.mxu0 %v3265_v13  ;;  %v1994_v1 = vsel %vm702_vm3, %v1978_v56, 0.0  ;;  %vm4976_vm2 = vcmp.eq.s32.totalorder %v3631_v46, %v3653_v54 }
 0xa57   :  { %2956 = vmatprep.subr.msk.mxu1 %vm4966_vm14, %v3266_v16  ;;  %vm4977_vm14 = vmmov %vm4976_vm2 }
 0xa58   :  { %v1959_v59 = vpop.permute.xlu0 %1958  ;;  %2920 = vmatmul.mubr.msk.f32.gmra.mxu1 %vm710_vm5, %v4165_v18  ;;  %v2022_v61 = vpop.permute.xlu1 %2021 }
 0xa59   :  { %v2043_v0 = vsel %vm2039_vm7, %v2020_v51, %v2022_v61  ;;  %1587 = vmatprep.mubr.f32.mxu1 %v3265_v13  ;;  %2957 = vmatpush1.msk.msra.mxu1 %vm4967_vm15, %v3266_v16  ;;  %vm4978_vm15 = vcmp.eq.s32.totalorder %v3631_v46, %v3673_v58 }
 0xa5a   :  { %v2059_v10 = vsel %vm172_vm6, 0.0, %v2043_v0  ;;  %2958 = vmatprep.subr.msk.mxu1 %vm4968_vm11, %v3266_v16  ;;  %vm4979_vm11 = vmmov %vm4978_vm15 }
 0xa5b   :  { %v4365_v3 = vadd.f32 %v2059_v10, %v1994_v1  ;;  %2959 = vmatpush1.msk.msra.mxu1 %vm4969_vm9, %v3266_v16  ;;  %vm4980_vm9 = vcmp.eq.s32.totalorder %v3631_v46, %v3695_v60 }
 0xa5c   :  { %v2024_v2 = vpop.permute.xlu0 %2023  ;;  %2921 = vmatmul.mubr.msk.f32.gmra.mxu1 %vm710_vm5, %v4197_v22  ;;  %v1961_v9 = vpop.permute.xlu1 %1960  ;;  %3178 = vmatprep.subr.msk.mxu1 %vm4970_vm10, %v3669_v57  ;;  %vm4981_vm10 = vmmov %vm4980_vm9 }
 0xa5d   :  { %2991 = vmatmul.mubr.msk.f32.gmra.mxu0 %vm710_vm5, %v4365_v3  ;;  %2160 = vmatprep.mubr.f32.mxu1 %v3265_v13  ;;  %v1979_v40 = vsel %vm1974_vm12, %v1959_v59, %v1961_v9 }
 0xa5e   :  { %2297 = vmatprep.mubr.f32.mxu0 %v3265_v13  ;;  %v1995_v5 = vsel %vm702_vm3, %v1979_v40, 0.0 }
 0xa60   :  { %v1963_v7 = vpop.permute.xlu0 %1962  ;;  %2960 = vmatmul.mubr.msk.f32.vlgmr.msra.gmra.mxu1 %vm710_vm5, %v4252_v30  ;;  %v2026_v11 = vpop.permute.xlu1 %2025 }
 0xa61   :  { %v2044_v12 = vsel %vm2039_vm7, %v2024_v2, %v2026_v11  ;;  %2166 = vmatprep.mubr.f32.mxu1 %v3265_v13  ;;  %3179 = vmatpush3.msk.msra.mxu1 %vm4971_vm0, %v3669_v57  ;;  %vm4982_vm0 = vcmp.eq.s32.totalorder %v3631_v46, %v3721_v62 }
 0xa62   :  { %v2060_v15 = vsel %vm172_vm6, 0.0, %v2044_v12  ;;  %3180 = vmatprep.subr.msk.mxu1 %vm4972_vm1, %v3266_v16  ;;  %vm4983_vm1 = vmmov %vm4982_vm0 }
 0xa63   :  { %v4392_v17 = vadd.f32 %v2060_v15, %v1995_v5  ;;  %3181 = vmatpush3.msk.msra.mxu1 %vm4973_vm8, %v3266_v16  ;;  %vm4984_vm8 = vcmp.eq.s32.totalorder %v3631_v46, %v3734_v63 }
 0xa64   :  { %v2028_v18 = vpop.permute.xlu0 %2027  ;;  %2961 = vmatmul.mubr.msk.f32.gmra.mxu1 %vm710_vm5, %v4287_v37  ;;  %v1965_v57 = vpop.permute.xlu1 %1964  ;;  %3182 = vmatprep.subr.msk.mxu1 %vm4974_vm4, %v3266_v16  ;;  %vm4985_vm4 = vmmov %vm4984_vm8 }
 0xa65   :  { %2992 = vmatmul.mubr.msk.f32.gmra.mxu0 %vm710_vm5, %v4392_v17  ;;  %2172 = vmatprep.mubr.f32.mxu1 %v3265_v13  ;;  %v1980_v45 = vsel %vm1974_vm12, %v1963_v7, %v1965_v57 }
 0xa66   :  { %2303 = vmatprep.mubr.f32.mxu0 %v3265_v13  ;;  %3183 = vmatpush3.msk.msra.mxu1 %vm4975_vm13, %v3266_v16  ;;  %v1996_v48 = vsel %vm702_vm3, %v1980_v45, 0.0  ;;  %vm4986_vm13 = vcmp.eq.s32.totalorder %v3631_v46, %v3761_v25 }
 0xa67   :  { %3184 = vmatprep.subr.msk.mxu1 %vm4976_vm2, %v3266_v16  ;;  %vm4987_vm2 = vmmov %vm4986_vm13 }
 0xa68   :  { %v1967_v6 = vpop.permute.xlu0 %1966  ;;  %2962 = vmatmul.mubr.msk.f32.gmra.mxu1 %vm710_vm5, %v4326_v50  ;;  %v2030_v19 = vpop.permute.xlu1 %2029 }
 0xa69   :  { %v2045_v20 = vsel %vm2039_vm7, %v2028_v18, %v2030_v19  ;;  %2178 = vmatprep.mubr.f32.mxu1 %v3265_v13  ;;  %3185 = vmatpush3.msk.msra.mxu1 %vm4977_vm14, %v3266_v16  ;;  %vm4988_vm14 = vcmp.eq.s32.totalorder %v3631_v46, %v3842_v4 }
 0xa6a   :  { %v2061_v21 = vsel %vm172_vm6, 0.0, %v2045_v20  ;;  %3186 = vmatprep.subr.msk.mxu1 %vm4978_vm15, %v3266_v16  ;;  %vm4989_vm15 = vmmov %vm4988_vm14 }
 0xa6b   :  { %v2069_v22 = vadd.f32 %v2061_v21, %v1996_v48  ;;  %3187 = vmatpush3.msk.msra.mxu1 %vm4979_vm11, %v3266_v16  ;;  %vm1880_vm11 = vcmask 56320  }
 0xa6c   :  { %v2032_v8 = vpop.permute.xlu0 %2031  ;;  %2963 = vmatmul.mubr.msk.f32.gmra.mxu1 %vm710_vm5, %v4365_v3  ;;  %v1969_v54 = vpop.permute.xlu1 %1968  ;;  %3188 = vmatprep.subr.msk.mxu1 %vm4980_vm9, %v3266_v16  ;;  %vm1699_vm9 = vcmask 662528  }
 0xa6d   :  { %2993 = vmatmul.mubr.msk.f32.gmra.mxu0 %vm710_vm5, %v2069_v22  ;;  %2184 = vmatprep.mubr.f32.mxu1 %v3265_v13  ;;  %v1981_v58 = vsel %vm1974_vm12, %v1967_v6, %v1969_v54 }
 0xa6e   :  { %2309 = vmatprep.mubr.f32.mxu0 %v3265_v13  ;;  %3189 = vmatpush3.msk.msra.mxu1 %vm4981_vm10, %v3266_v16  ;;  %v1997_v60 = vsel %vm702_vm3, %v1981_v58, 0.0 }
 0xa6f   :  { %3190 = vmatprep.subr.msk.mxu1 %vm4982_vm0, %v3266_v16 }
 0xa70   :  { %2964 = vmatmul.mubr.msk.f32.gmra.mxu1 %vm710_vm5, %v4392_v17  ;;  %v2034_v23 = vpop.permute.xlu1 %2033  ;;  %v1971_v26 = vpop.permute.xlu0 %1970 }
 0xa71   :  { %v2046_v24 = vsel %vm2039_vm7, %v2032_v8, %v2034_v23  ;;  %2190 = vmatprep.mubr.f32.mxu1 %v3265_v13  ;;  %3191 = vmatpush3.msk.msra.mxu1 %vm4983_vm1, %v3266_v16  ;;  %vm1824_vm1 = vcmask 39936  }
 0xa72   :  { %v2062_v27 = vsel %vm172_vm6, 0.0, %v2046_v24  ;;  %3192 = vmatprep.subr.msk.mxu1 %vm4984_vm8, %v3266_v16 }
 0xa73   :  { %v2070_v28 = vadd.f32 %v2062_v27, %v1997_v60  ;;  %3193 = vmatpush3.msk.msra.mxu1 %vm4985_vm4, %v3266_v16  ;;  %vm1852_vm4 = vcmask 48128  }
 0xa74   :  { %2965 = vmatmul.mubr.msk.f32.gmra.mxu1 %vm710_vm5, %v2069_v22  ;;  %v1973_v62 = vpop.permute.xlu1 %1972  ;;  %3194 = vmatprep.subr.msk.mxu1 %vm4986_vm13, %v3266_v16  ;;  %v2036_v52 = vpop.permute.xlu0 %2035 }
 0xa75   :  { %2994 = vmatmul.mubr.msk.f32.gmra.mxu0 %vm710_vm5, %v2070_v28  ;;  %2196 = vmatprep.mubr.f32.mxu1 %v3265_v13  ;;  %v1982_v63 = vsel %vm1974_vm12, %v1971_v26, %v1973_v62 }
 0xa76   :  { %2315 = vmatprep.mubr.f32.mxu0 %v3265_v13  ;;  %3195 = vmatpush3.msk.msra.mxu1 %vm4987_vm2, %v3266_v16  ;;  %v1998_v25 = vsel %vm702_vm3, %v1982_v63, 0.0  ;;  %vm4990_vm3 = vcmask 15360   ;;  %vm1726_vm2 = vcmask 670720  }
 0xa77   :  { %3196 = vmatprep.subr.msk.mxu1 %vm4988_vm14, %v3266_v16  ;;  %vm4992_vm12 = vmmov %vm4990_vm3  ;;  %vm4998_vm14 = vcmask 31744  }
 0xa78   :  { %2966 = vmatmul.mubr.msk.f32.gmra.mxu1 %vm710_vm5, %v2070_v28  ;;  %v2038_v29 = vpop.permute.xlu1 %2037  ;;  %vm4996_vm8 = vmmov %vm4990_vm3 }
 0xa79   :  { %v2047_v14 = vsel %vm2039_vm7, %v2036_v52, %v2038_v29  ;;  %2202 = vmatprep.mubr.f32.mxu1 %v3265_v13  ;;  %3197 = vmatpush3.msk.msra.mxu1 %vm4989_vm15, %v3266_v16  ;;  %vm4997_vm13 = vmmov %vm4990_vm3 }
 0xa7a   :  { %v2063_v31 = vsel %vm172_vm6, 0.0, %v2047_v14 }
 0xa7b   :  { %v2071_v53 = vadd.f32 %v2063_v31, %v1998_v25 }
 0xa7d   :  { %2967 = vmatmul.mubr.msk.f32.gmra.mxu1 %vm710_vm5, %v2071_v53  ;;  %2995 = vmatmul.mubr.msk.f32.gmra.mxu0 %vm710_vm5, %v2071_v53 }
 0xa7e   :  { %3198 = vmatprep.mubr.msk.f32.mxu1 %vm710_vm5, %v4252_v30 }
 0xa81   :  { %3199 = vmatmul.mubr.msk.f32.vlgmr.msra.gmra.mxu1 %vm710_vm5, %v4287_v37 }
 0xa82   :  { %3201 = vmatprep.mubr.msk.f32.mxu1 %vm710_vm5, %v4326_v50 }
 0xa85   :  { %3202 = vmatmul.mubr.msk.f32.gmra.mxu1 %vm710_vm5, %v4365_v3 }
 0xa86   :  { %3204 = vmatprep.mubr.msk.f32.mxu1 %vm710_vm5, %v4392_v17 }
 0xa89   :  { %3205 = vmatmul.mubr.msk.f32.gmra.mxu1 %vm710_vm5, %v2069_v22 }
 0xa8a   :  { %3207 = vmatprep.mubr.msk.f32.mxu1 %vm710_vm5, %v2070_v28 }
 0xa8d   :  { %3208 = vmatmul.mubr.msk.f32.gmra.mxu1 %vm710_vm5, %v2071_v53  ;;  %vm4991_vm5 = vcmask 23552  }
 0xa8e   :  { %vm4993_vm7 = vmmov %vm4991_vm5 }
 0xa8f   :  { %vm4994_vm10 = vmmov %vm4991_vm5 }
 0xa90   :  { %vm4995_vm0 = vmmov %vm4991_vm5 }
 0xa91   :  { %vm4999_vm15 = vmmov %vm4995_vm0 }
 0xae0   :  { %v4512_v13 = vpop.f32.mrf.mxu1 }
 0xae2   :  { %v4514_v16 = vpop.f32.mrf.mxu1 }
 0xae4   :  { %v1440_v46 = vpop.f32.mrf.mxu1  ;;  %v4521_v35 = vpop.f32.mrf.mxu0 }
 0xae5   :  { %1706 = vrot.lane.b32.xlu1 %v1440_v46, %s3269_s26 }
 0xae6   :  { %v1442_v4 = vpop.f32.mrf.mxu1  ;;  %v4525_v38 = vpop.f32.mrf.mxu0 }
 0xae7   :  { %1708 = vrot.lane.b32.xlu0 %v1442_v4, %s3269_s26 }
 0xae8   :  { %v1446_v30 = vpop.f32.mrf.mxu1 }
 0xae9   :  { %1733 = vrot.lane.b32.xlu1 %v1446_v30, %s3274_s25 }
 0xaea   :  { %v1448_v32 = vpop.f32.mrf.mxu1 }
 0xaeb   :  { %1735 = vrot.lane.b32.xlu0 %v1448_v32, %s3274_s25 }
 0xaec   :  { %v1452_v33 = vpop.f32.mrf.mxu1  ;;  %v4528_v41 = vpop.f32.mrf.mxu0 }
 0xaed   :  { %1760 = vrot.lane.b32.xlu1 %v1452_v33, %s3275_s27 }
 0xaee   :  { %v1454_v34 = vpop.f32.mrf.mxu1  ;;  %v4535_v44 = vpop.f32.mrf.mxu0 }
 0xaef   :  { %1762 = vrot.lane.b32.xlu0 %v1454_v34, %s3275_s27 }
 0xaf0   :  { %v1458_v36 = vpop.f32.mrf.mxu1 }
 0xaf1   :  { %1787 = vrot.lane.b32.xlu1 %v1458_v36, %s3280_s19 }
 0xaf2   :  { %v1460_v37 = vpop.f32.mrf.mxu1 }
 0xaf3   :  { %1789 = vrot.lane.b32.xlu0 %v1460_v37, %s3280_s19 }
 0xaf4   :  { %v1464_v39 = vpop.f32.mrf.mxu1  ;;  %v4539_v49 = vpop.f32.mrf.mxu0 }
 0xaf5   :  { %1814 = vrot.lane.b32.xlu1 %v1464_v39, %s3281_s20 }
 0xaf6   :  { %v4531_v42 = vpop.f32.mrf.mxu1  ;;  %v4545_v55 = vpop.f32.mrf.mxu0 }
 0xaf8   :  { %v4533_v43 = vpop.f32.mrf.mxu1 }
 0xafa   :  { %v4537_v47 = vpop.f32.mrf.mxu1 }
 0xafc   :  { %v4541_v50 = vpop.f32.mrf.mxu1  ;;  %v4549_v59 = vpop.f32.mrf.mxu0 }
 0xafe   :  { %v4543_v51 = vpop.f32.mrf.mxu1  ;;  %v4555_v1 = vpop.f32.mrf.mxu0 }
 0xb00   :  { %v4547_v56 = vpop.f32.mrf.mxu1 }
 0xb02   :  { %v4551_v61 = vpop.f32.mrf.mxu1 }
 0xb04   :  { %v4553_v0 = vpop.f32.mrf.mxu1 }
 0xb05   :  { %v4559_v3 = vpop.f32.mrf.mxu0 }
 0xb06   :  { %v4557_v10 = vpop.f32.mrf.mxu1 }
 0xb07   :  { %v4565_v40 = vpop.f32.mrf.mxu0 }
 0xb08   :  { %v4561_v2 = vpop.f32.mrf.mxu1 }
 0xb0a   :  { %v4563_v9 = vpop.f32.mrf.mxu1 }
 0xb0c   :  { %v4567_v7 = vpop.f32.mrf.mxu1 }
 0xb0d   :  { %v2281_v11 = vpop.f32.mrf.mxu0 }
 0xb0e   :  { %v4569_v12 = vpop.f32.mrf.mxu1  ;;  %2437 = vrot.lane.b32.xlu0 %v2281_v11, %s3269_s26 }
 0xb0f   :  { %v2283_v5 = vpop.f32.mrf.mxu0 }
 0xb10   :  { %v4572_v15 = vpop.f32.mrf.mxu1  ;;  %2439 = vrot.lane.b32.xlu1 %v2283_v5, %s3269_s26 }
 0xb12   :  { %v4575_v17 = vpop.f32.mrf.mxu1 }
 0xb14   :  { %v4577_v18 = vpop.f32.mrf.mxu1 }
 0xb15   :  { %v2287_v57 = vpop.f32.mrf.mxu0 }
 0xb16   :  { %v4579_v45 = vpop.f32.mrf.mxu1  ;;  %2463 = vrot.lane.b32.xlu1 %v2287_v57, %s3274_s25 }
 0xb17   :  { %v2289_v6 = vpop.f32.mrf.mxu0 }
 0xb18   :  { %v4582_v19 = vpop.f32.mrf.mxu1  ;;  %2465 = vrot.lane.b32.xlu0 %v2289_v6, %s3274_s25 }
 0xb1a   :  { %v4585_v20 = vpop.f32.mrf.mxu1 }
 0xb1c   :  { %v4587_v48 = vpop.f32.mrf.mxu1 }
 0xb1d   :  { %v2293_v21 = vpop.f32.mrf.mxu0 }
 0xb1e   :  { %v4589_v22 = vpop.f32.mrf.mxu1  ;;  %2489 = vrot.lane.b32.xlu0 %v2293_v21, %s3275_s27 }
 0xb1f   :  { %v2295_v8 = vpop.f32.mrf.mxu0 }
 0xb20   :  { %v4592_v54 = vpop.f32.mrf.mxu1  ;;  %2491 = vrot.lane.b32.xlu1 %v2295_v8, %s3275_s27 }
 0xb22   :  { %v4595_v58 = vpop.f32.mrf.mxu1 }
 0xb24   :  { %v2168_v23 = vpop.f32.mrf.mxu1 }
 0xb25   :  { %v2299_v24 = vpop.f32.mrf.mxu0 }
 0xb26   :  { %v2170_v60 = vpop.f32.mrf.mxu1  ;;  %2515 = vrot.lane.b32.xlu1 %v2299_v24, %s3280_s19 }
 0xb27   :  { %v2301_v26 = vpop.f32.mrf.mxu0 }
 0xb28   :  { %v2174_v27 = vpop.f32.mrf.mxu1  ;;  %2517 = vrot.lane.b32.xlu0 %v2301_v26, %s3280_s19 }
 0xb2a   :  { %v2176_v28 = vpop.f32.mrf.mxu1 }
 0xb2c   :  { %v2180_v62 = vpop.f32.mrf.mxu1 }
 0xb2d   :  { %v2305_v63 = vpop.f32.mrf.mxu0 }
 0xb2e   :  { %v2182_v52 = vpop.f32.mrf.mxu1  ;;  %2541 = vrot.lane.b32.xlu0 %v2305_v63, %s3281_s20 }
 0xb2f   :  { %v2307_v29 = vpop.f32.mrf.mxu0 }
 0xb30   :  { %v2186_v14 = vpop.f32.mrf.mxu1  ;;  %2543 = vrot.lane.b32.xlu1 %v2307_v29, %s3281_s20 }
 0xb32   :  { %v2188_v25 = vpop.f32.mrf.mxu1 }
 0xb34   :  { %v2192_v31 = vpop.f32.mrf.mxu1 }
 0xb35   :  { %v2311_v53 = vpop.f32.mrf.mxu0 }
 0xb36   :  { %2567 = vrot.lane.b32.xlu1 %v2311_v53, %s3282_s21  ;;  %v2194_v46 = vpop.f32.mrf.mxu1 }
 0xb37   :  { %v2313_v4 = vpop.f32.mrf.mxu0 }
 0xb38   :  { %2569 = vrot.lane.b32.xlu0 %v2313_v4, %s3282_s21  ;;  %v2198_v30 = vpop.f32.mrf.mxu1 }
 0xb3a   :  { %v2200_v33 = vpop.f32.mrf.mxu1 }
 0xb3d   :  { %v2317_v32 = vpop.f32.mrf.mxu0  ;;  %v2204_v36 = vpop.f32.mrf.mxu1 }
 0xb3e   :  { %2593 = vrot.lane.b32.xlu0 %v2317_v32, %s3283_s22 }
 0xb3f   :  { %v2319_v34 = vpop.f32.mrf.mxu0  ;;  %v2206_v37 = vpop.f32.mrf.mxu1 }
 0xb40   :  { %2595 = vrot.lane.b32.xlu1 %v2319_v34, %s3283_s22 }
 0xb41   :  { %v3200_v39 = vpop.f32.mrf.mxu1 }
 0xb42   :  { %2433 = vrot.lane.b32.xlu0 %v2168_v23, %s3269_s26 }
 0xb43   :  { %v4612_v11 = vpop.f32.mrf.mxu1 }
 0xb44   :  { %2435 = vrot.lane.b32.xlu1 %v2170_v60, %s3269_s26  ;;  %v2427_v34 = vsel %vm1699_vm9, %v4612_v11, 0.0 }
 0xb45   :  { %v3203_v5 = vpop.f32.mrf.mxu1 }
 0xb46   :  { %2461 = vrot.lane.b32.xlu0 %v2176_v28, %s3274_s25 }
 0xb47   :  { %v2398_v57 = vpop.f32.mrf.mxu1 }
 0xb48   :  { %2459 = vrot.lane.b32.xlu1 %v2174_v27, %s3274_s25 }
 0xb49   :  { %v3206_v8 = vpop.f32.mrf.mxu1 }
 0xb4a   :  { %2485 = vrot.lane.b32.xlu0 %v2180_v62, %s3275_s27 }
 0xb4b   :  { %v2408_v26 = vpop.f32.mrf.mxu1 }
 0xb4c   :  { %2487 = vrot.lane.b32.xlu1 %v2182_v52, %s3275_s27 }
 0xb4d   :  { %v3209_v53 = vpop.f32.mrf.mxu1 }
 0xb4e   :  { %2513 = vrot.lane.b32.xlu0 %v2188_v25, %s3280_s19 }
 0xb4f   :  { %v2418_v32 = vpop.f32.mrf.mxu1 }
 0xb50   :  { %2511 = vrot.lane.b32.xlu1 %v2186_v14, %s3280_s19 }
 0xb52   :  { %2537 = vrot.lane.b32.xlu0 %v2192_v31, %s3281_s20 }
 0xb54   :  { %2539 = vrot.lane.b32.xlu1 %v2194_v46, %s3281_s20 }
 0xb56   :  { %2565 = vrot.lane.b32.xlu0 %v2200_v33, %s3282_s21 }
 0xb57   :  { %v1707_v6 = vpop.permute.xlu1 %1706 }
 0xb58   :  { %2563 = vrot.lane.b32.xlu1 %v2198_v30, %s3282_s21  ;;  %v1725_v60 = vsel %vm172_vm6, 0.0, %v1707_v6 }
 0xb59   :  { %v4619_v21 = vpop.permute.xlu0 %1708  ;;  %v1891_v52 = vadd.f32 %v1725_v60, %v4512_v13 }
 0xb5a   :  { %2589 = vrot.lane.b32.xlu0 %v2204_v36, %s3283_s22  ;;  %v1716_v28 = vsel %vm172_vm6, %v1707_v6, %v4619_v21 }
 0xb5b   :  { %v1734_v23 = vpop.permute.xlu1 %1733  ;;  %v1892_v46 = vadd.f32 %v1716_v28, %v4514_v16 }
 0xb5c   :  { %2591 = vrot.lane.b32.xlu1 %v2206_v37, %s3283_s22  ;;  %v1752_v62 = vsel %vm4990_vm3, 0.0, %v1734_v23  ;;  %vm5000_vm3 = vmmov %vm4995_vm0 }
 0xb5d   :  { %v4623_v24 = vpop.permute.xlu0 %1735 }
 0xb5e   :  { %2441 = vrot.lane.b32.xlu0 %v3200_v39, %s3269_s26  ;;  %v1743_v25 = vsel %vm4992_vm12, %v1734_v23, %v4623_v24 }
 0xb5f   :  { %v1761_v27 = vpop.permute.xlu1 %1760 }
 0xb60   :  { %v1779_v63 = vsel %vm4991_vm5, 0.0, %v1761_v27  ;;  %2467 = vrot.lane.b32.xlu1 %v2398_v57, %s3274_s25  ;;  %vm5001_vm5 = vmmov %vm4996_vm8 }
 0xb61   :  { %v1896_v29 = vadd.f32 %v1779_v63, %v1752_v62  ;;  %v4633_v14 = vpop.permute.xlu0 %1762  ;;  %vm5002_vm12 = vmmov %vm5001_vm5 }
 0xb62   :  { %v1770_v31 = vsel %vm4993_vm7, %v1761_v27, %v4633_v14  ;;  %2493 = vrot.lane.b32.xlu0 %v3203_v5, %s3275_s27  ;;  %vm5003_vm7 = vmmov %vm4998_vm14 }
 0xb63   :  { %v4641_v4 = vadd.f32 %v1896_v29, %v1891_v52  ;;  %v1897_v30 = vadd.f32 %v1770_v31, %v1743_v25  ;;  %v4685_v16 = vpop.permute.xlu1 %1787 }
 0xb64   :  { %2519 = vrot.lane.b32.xlu1 %v2408_v26, %s3280_s19 }
 0xb65   :  { %v4644_v13 = vadd.f32 %v1897_v30, %v1892_v46 }
 0xb66   :  { %2545 = vrot.lane.b32.xlu0 %v3206_v8, %s3281_s20 }
 0xb68   :  { %2571 = vrot.lane.b32.xlu1 %v2418_v32, %s3282_s21 }
 0xb6a   :  { %2597 = vrot.lane.b32.xlu0 %v3209_v53, %s3283_s22 }
 0xb6c   :  { %1842 = vrot.lane.b32.xlu1 %v4533_v43, %s3282_s21 }
 0xb6e   :  { %1816 = vrot.lane.b32.xlu0 %v4531_v42, %s3281_s20  ;;  %v4695_v42 = vpop.permute.xlu1 %1814 }
 0xb70   :  { %1870 = vrot.lane.b32.xlu1 %v4541_v50, %s3283_s22 }
 0xb72   :  { %1844 = vrot.lane.b32.xlu0 %v4537_v47, %s3282_s21 }
 0xb74   :  { %1710 = vrot.lane.b32.xlu1 %v4553_v0, %s3269_s26 }
 0xb76   :  { %1872 = vrot.lane.b32.xlu0 %v4543_v51, %s3283_s22 }
 0xb78   :  { %1764 = vrot.lane.b32.xlu1 %v4567_v7, %s3275_s27 }
 0xb7a   :  { %1737 = vrot.lane.b32.xlu0 %v4561_v2, %s3274_s25 }
 0xb7c   :  { %1818 = vrot.lane.b32.xlu1 %v4577_v18, %s3281_s20 }
 0xb7e   :  { %1791 = vrot.lane.b32.xlu0 %v4572_v15, %s3280_s19 }
 0xb80   :  { %1874 = vrot.lane.b32.xlu1 %v4587_v48, %s3283_s22 }
 0xb82   :  { %1846 = vrot.lane.b32.xlu0 %v4582_v19, %s3282_s21  ;;  %v4701_v43 = vpop.permute.xlu1 %2439 }
 0xb84   :  { %1714 = vrot.lane.b32.xlu1 %v4521_v35, %s3269_s26  ;;  %v4691_v35 = vpop.permute.xlu0 %1789 }
 0xb86   :  { %1712 = vrot.lane.b32.xlu0 %v4557_v10, %s3269_s26  ;;  %s3284_s26 = smov 88  }
 0xb88   :  { %1741 = vrot.lane.b32.xlu1 %v4535_v44, %s3274_s25  ;;  %v2464_v47 = vpop.permute.xlu1 %2463 }
 0xb8a   :  { %1739 = vrot.lane.b32.xlu0 %v4563_v9, %s3274_s25 }
 0xb8c   :  { %1768 = vrot.lane.b32.xlu1 %v4528_v41, %s3275_s27  ;;  %v2438_v41 = vpop.permute.xlu0 %2437 }
 0xb8d   :  { %v2445_v8 = vsel %vm172_vm6, %v2438_v41, %v4701_v43 }
 0xb8e   :  { %1766 = vrot.lane.b32.xlu0 %v4569_v12, %s3275_s27 }
 0xb90   :  { %1795 = vrot.lane.b32.xlu1 %v4545_v55, %s3280_s19  ;;  %v4705_v44 = vpop.permute.xlu0 %2465 }
 0xb91   :  { %v2471_v36 = vsel %vm4996_vm8, %v2464_v47, %v4705_v44  ;;  %vm1780_vm8 = vcmask 687104  }
 0xb92   :  { %1793 = vrot.lane.b32.xlu0 %v4575_v17, %s3280_s19  ;;  %v4711_v50 = vpop.permute.xlu1 %2491 }
 0xb94   :  { %1822 = vrot.lane.b32.xlu1 %v4539_v49, %s3281_s20  ;;  %v2490_v49 = vpop.permute.xlu0 %2489 }
 0xb96   :  { %1820 = vrot.lane.b32.xlu0 %v4579_v45, %s3281_s20 }
 0xb98   :  { %1850 = vrot.lane.b32.xlu1 %v4555_v1, %s3282_s21  ;;  %v2516_v55 = vpop.permute.xlu1 %2515 }
 0xb9a   :  { %1848 = vrot.lane.b32.xlu0 %v4585_v20, %s3282_s21  ;;  %v4713_v51 = vpop.permute.xlu0 %2517 }
 0xb9b   :  { %v2523_v23 = vsel %vm4998_vm14, %v2516_v55, %v4713_v51  ;;  %vm1753_vm14 = vcmask 678912  }
 0xb9c   :  { %1878 = vrot.lane.b32.xlu1 %v4549_v59, %s3283_s22 }
 0xb9e   :  { %1876 = vrot.lane.b32.xlu0 %v4589_v22, %s3283_s22  ;;  %v2497_v22 = vsel %vm4994_vm10, %v2490_v49, %v4711_v50  ;;  %vm5004_vm10 = vmmov %vm5003_vm7 }
 0xb9f   :  { %v2617_v11 = vadd.f32 %v2497_v22, %v2471_v36 }
 0xba0   :  { %v2542_v0 = vpop.permute.xlu0 %2541 }
 0xba2   :  { %v4715_v1 = vpop.permute.xlu1 %2543 }
 0xba3   :  { %v2549_v27 = vsel %vm1824_vm1, %v2542_v0, %v4715_v1 }
 0xba8   :  { %v2568_v2 = vpop.permute.xlu1 %2567 }
 0xbaa   :  { %v4717_v10 = vpop.permute.xlu0 %2569 }
 0xbab   :  { %v2575_v28 = vsel %vm1852_vm4, %v2568_v2, %v4717_v10 }
 0xbb0   :  { %v2594_v9 = vpop.permute.xlu0 %2593 }
 0xbb2   :  { %v4719_v7 = vpop.permute.xlu1 %2595 }
 0xbb3   :  { %v2601_v39 = vsel %vm1880_vm11, %v2594_v9, %v4719_v7 }
 0xbb4   :  { %v2434_v59 = vpop.permute.xlu0 %2433  ;;  %v2627_v52 = vadd.f32 %v2601_v39, %v2575_v28 }
 0xbb5   :  { %v2452_v5 = vsel %vm172_vm6, 0.0, %v2434_v59 }
 0xbb6   :  { %v2436_v12 = vpop.permute.xlu1 %2435  ;;  %v2609_v29 = vadd.f32 %v2452_v5, %v4592_v54 }
 0xbb7   :  { %v2443_v57 = vsel %vm172_vm6, %v2434_v59, %v2436_v12  ;;  %v2444_v25 = vsel %vm172_vm6, %v2436_v12, %v2438_v41 }
 0xbb8   :  { %v2462_v15 = vpop.permute.xlu0 %2461  ;;  %v2610_v31 = vadd.f32 %v2443_v57, %v4595_v58 }
 0xbb9   :  { %v2470_v46 = vsel %vm5001_vm5, %v2462_v15, %v2464_v47 }
 0xbba   :  { %v2460_v17 = vpop.permute.xlu1 %2459 }
 0xbbb   :  { %v2478_v6 = vsel %vm4997_vm13, 0.0, %v2460_v17  ;;  %v2469_v30 = vsel %vm5002_vm12, %v2460_v17, %v2462_v15  ;;  %vm5006_vm13 = vmmov %vm5000_vm3  ;;  %vm1807_vm12 = vcmask 695296  }
 0xbbc   :  { %v2486_v18 = vpop.permute.xlu0 %2485 }
 0xbbd   :  { %v2504_v33 = vsel %vm4995_vm0, 0.0, %v2486_v18  ;;  %vm5005_vm0 = vmmov %vm5003_vm7 }
 0xbbe   :  { %v2488_v45 = vpop.permute.xlu1 %2487  ;;  %v2614_v60 = vadd.f32 %v2504_v33, %v2478_v6 }
 0xbbf   :  { %v2495_v62 = vsel %vm4999_vm15, %v2486_v18, %v2488_v45  ;;  %v2496_v63 = vsel %vm5000_vm3, %v2488_v45, %v2490_v49  ;;  %vm5007_vm15 = vmmov %vm5001_vm5  ;;  %vm1835_vm3 = vcmask 703488   ;;  %vm1863_vm5 = vcmask 711680  }
 0xbc0   :  { %v2514_v19 = vpop.permute.xlu0 %2513  ;;  %v2629_v22 = vadd.f32 %v2614_v60, %v2609_v29  ;;  %v2615_v18 = vadd.f32 %v2495_v62, %v2469_v30  ;;  %v2616_v33 = vadd.f32 %v2496_v63, %v2470_v46  ;;  %v2622_v62 = vadd.f32 %v2549_v27, %v2523_v23 }
 0xbc1   :  { %v2522_v12 = vsel %vm5005_vm0, %v2514_v19, %v2516_v55  ;;  %v2611_v55 = vadd.f32 %v2444_v25, %v4559_v3 }
 0xbc2   :  { %v2512_v20 = vpop.permute.xlu1 %2511 }
 0xbc3   :  { %v2521_v49 = vsel %vm5003_vm7, %v2512_v20, %v2514_v19  ;;  %v2530_v54 = vsel %vm5004_vm10, 0.0, %v2512_v20  ;;  %v2630_v19 = vadd.f32 %v2615_v18, %v2610_v31  ;;  %vm5008_vm7 = vmmov %vm5005_vm0 }
 0xbc4   :  { %v2538_v48 = vpop.permute.xlu0 %2537  ;;  %vm5009_vm10 = vmmov %vm5005_vm0 }
 0xbc5   :  { %v2556_v32 = vsel %vm1824_vm1, 0.0, %v2538_v48 }
 0xbc6   :  { %v2540_v37 = vpop.permute.xlu1 %2539  ;;  %v2619_v15 = vadd.f32 %v2556_v32, %v2530_v54  ;;  %v2637_v32 = vadd.f32 %v2627_v52, %v2622_v62 }
 0xbc7   :  { %v2547_v59 = vsel %vm1824_vm1, %v2538_v48, %v2540_v37  ;;  %v2548_v41 = vsel %vm1824_vm1, %v2540_v37, %v2542_v0 }
 0xbc8   :  { %v2566_v26 = vpop.permute.xlu0 %2565  ;;  %v2620_v17 = vadd.f32 %v2547_v59, %v2521_v49  ;;  %v2621_v6 = vadd.f32 %v2548_v41, %v2522_v12  ;;  %v2631_v59 = vadd.f32 %v2616_v33, %v2611_v55  ;;  %v1797_v55 = vsel %vm5005_vm0, %v4685_v16, %v4691_v35 }
 0xbc9   :  { %v2574_v39 = vsel %vm1852_vm4, %v2566_v26, %v2568_v2 }
 0xbca   :  { %v2564_v53 = vpop.permute.xlu1 %2563 }
 0xbcb   :  { %v2582_v58 = vsel %vm1852_vm4, 0.0, %v2564_v53  ;;  %v2573_v5 = vsel %vm1852_vm4, %v2564_v53, %v2566_v26 }
 0xbcc   :  { %v2590_v45 = vpop.permute.xlu0 %2589 }
 0xbcd   :  { %v2608_v47 = vsel %vm1880_vm11, 0.0, %v2590_v45 }
 0xbce   :  { %v2624_v36 = vadd.f32 %v2608_v47, %v2582_v58  ;;  %v2592_v48 = vpop.permute.xlu1 %2591 }
 0xbcf   :  { %v2599_v57 = vsel %vm1880_vm11, %v2590_v45, %v2592_v48  ;;  %v2600_v20 = vsel %vm1880_vm11, %v2592_v48, %v2594_v9  ;;  %v2612_v9 = vadd.f32 %v2445_v8, %v4565_v40 }
 0xbd0   :  { %v2634_v0 = vadd.f32 %v2624_v36, %v2619_v15  ;;  %v2625_v37 = vadd.f32 %v2599_v57, %v2573_v5  ;;  %v2626_v60 = vadd.f32 %v2600_v20, %v2574_v39  ;;  %v2442_v28 = vpop.permute.xlu0 %2441  ;;  %v1834_v36 = vsel %vm1824_vm1, 0.0, %v4695_v42 }
 0xbd1   :  { %v2446_v63 = vsel %vm172_vm6, %v4701_v43, %v2442_v28  ;;  %v2632_v3 = vadd.f32 %v2617_v11, %v2612_v9  ;;  %v1806_v39 = vsel %vm5009_vm10, 0.0, %v4685_v16 }
 0xbd2   :  { %v2639_v29 = vadd.f32 %v2634_v0, %v2629_v22  ;;  %v2635_v2 = vadd.f32 %v2625_v37, %v2620_v17  ;;  %v2636_v46 = vadd.f32 %v2626_v60, %v2621_v6  ;;  %v2453_v26 = vsel %vm1726_vm2, %v2446_v63, 0.0  ;;  %v2468_v53 = vpop.permute.xlu1 %2467 }
 0xbd3   :  { %v2613_v30 = vadd.f32 %v2453_v26, %v2427_v34  ;;  %v2642_v25 = vadd.f32 %v2637_v32, %v2632_v3  ;;  %v2472_v40 = vsel %vm5007_vm15, %v4705_v44, %v2468_v53 }
 0xbd4   :  { %v2640_v49 = vadd.f32 %v2635_v2, %v2630_v19  ;;  %v2494_v45 = vpop.permute.xlu0 %2493  ;;  %2649 = vrot.lane.b32.xlu0 %v2639_v29, %s3284_s26  ;;  %v2641_v23 = vadd.f32 %v2636_v46, %v2631_v59  ;;  %v2479_v31 = vsel %vm1753_vm14, %v2472_v40, 0.0 }
 0xbd5   :  { %v2498_v43 = vsel %vm5006_vm13, %v4711_v50, %v2494_v45  ;;  %v1700_v45 = vsel %vm1699_vm9, %v4525_v38, 0.0  ;;  %vm5010_vm13 = vmmov %vm5007_vm15  ;;  %vm5011_vm15 = vcmask 23552  }
 0xbd6   :  { %2651 = vrot.lane.b32.xlu1 %v2640_v49, %s3284_s26  ;;  %v2520_v27 = vpop.permute.xlu1 %2519  ;;  %v2505_v8 = vsel %vm1780_vm8, %v2498_v43, 0.0  ;;  %vm5012_vm9 = vmmov %vm5005_vm0 }
 0xbd7   :  { %v2524_v50 = vsel %vm5008_vm7, %v4713_v51, %v2520_v27  ;;  %v2618_v18 = vadd.f32 %v2505_v8, %v2479_v31 }
 0xbd8   :  { %v2546_v34 = vpop.permute.xlu0 %2545  ;;  %2653 = vrot.lane.b32.xlu0 %v2641_v23, %s3284_s26 }
 0xbd9   :  { %v2550_v11 = vsel %vm1824_vm1, %v4715_v1, %v2546_v34  ;;  %v2531_v1 = vsel %vm1807_vm12, %v2524_v50, 0.0  ;;  %v2633_v12 = vadd.f32 %v2618_v18, %v2613_v30 }
 0xbda   :  { %2655 = vrot.lane.b32.xlu1 %v2642_v25, %s3284_s26  ;;  %v2572_v52 = vpop.permute.xlu1 %2571  ;;  %v2557_v44 = vsel %vm1835_vm3, %v2550_v11, 0.0 }
 0xbdb   :  { %v2576_v22 = vsel %vm1852_vm4, %v4717_v10, %v2572_v52  ;;  %v2623_v51 = vadd.f32 %v2557_v44, %v2531_v1 }
 0xbdc   :  { %v2583_v33 = vsel %vm1863_vm5, %v2576_v22, 0.0  ;;  %v2598_v54 = vpop.permute.xlu0 %2597 }
 0xbdd   :  { %v2602_v41 = vsel %vm1880_vm11, %v4719_v7, %v2598_v54  ;;  %v1901_v7 = vadd.f32 %v1834_v36, %v1806_v39 }
 0xbde   :  { %v2628_v58 = vadd.f32 %v2602_v41, %v2583_v33  ;;  %v1843_v47 = vpop.permute.xlu1 %1842 }
 0xbdf   :  { %v1862_v5 = vsel %vm1852_vm4, 0.0, %v1843_v47 }
 0xbe0   :  { %v2638_v15 = vadd.f32 %v2628_v58, %v2623_v51  ;;  %v4786_v17 = vpop.permute.xlu0 %1816 }
 0xbe1   :  { %v1825_v60 = vsel %vm1824_vm1, %v4695_v42, %v4786_v17 }
 0xbe2   :  { %v2643_v10 = vadd.f32 %v2638_v15, %v2633_v12  ;;  %v1871_v48 = vpop.permute.xlu1 %1870  ;;  %v1902_v29 = vadd.f32 %v1825_v60, %v1797_v55 }
 0xbe3   :  { %v1890_v57 = vsel %vm1880_vm11, 0.0, %v1871_v48 }
 0xbe4   :  { %v1906_v20 = vadd.f32 %v1890_v57, %v1862_v5  ;;  %v1845_v6 = vpop.permute.xlu0 %1844  ;;  %2657 = vrot.lane.b32.xlu0 %v2643_v10, %s3284_s26 }
 0xbe5   :  { %v1853_v19 = vsel %vm1852_vm4, %v1843_v47, %v1845_v6 }
 0xbe6   :  { %v1916_v0 = vadd.f32 %v1906_v20, %v1901_v7  ;;  %v4795_v37 = vpop.permute.xlu1 %1710 }
 0xbe7   :  { %v1717_v55 = vsel %vm172_vm6, %v4619_v21, %v4795_v37 }
 0xbe8   :  { %v4801_v28 = vadd.f32 %v1916_v0, %v4641_v4  ;;  %v1873_v62 = vpop.permute.xlu0 %1872 }
 0xbe9   :  { %v1881_v63 = vsel %vm1880_vm11, %v1871_v48, %v1873_v62 }
 0xbea   :  { %v1907_v2 = vadd.f32 %v1881_v63, %v1853_v19  ;;  %v1765_v46 = vpop.permute.xlu1 %1764 }
 0xbec   :  { %v1917_v26 = vadd.f32 %v1907_v2, %v1902_v29  ;;  %v1738_v53 = vpop.permute.xlu0 %1737 }
 0xbee   :  { %v4809_v30 = vadd.f32 %v1917_v26, %v4644_v13  ;;  %v1819_v42 = vpop.permute.xlu1 %1818 }
 0xbf0   :  { %v1792_v4 = vpop.permute.xlu0 %1791 }
 0xbf2   :  { %v1875_v9 = vpop.permute.xlu1 %1874 }
 0xbf3   :  { %v1882_v0 = vsel %vm1880_vm11, %v1873_v62, %v1875_v9 }
 0xbf4   :  { %v1847_v32 = vpop.permute.xlu0 %1846 }
 0xbf5   :  { %v1854_v57 = vsel %vm1852_vm4, %v1845_v6, %v1847_v32  ;;  %v1826_v6 = vsel %vm1824_vm1, %v4786_v17, %v1819_v42 }
 0xbf6   :  { %v1715_v59 = vpop.permute.xlu1 %1714  ;;  %v1908_v63 = vadd.f32 %v1882_v0, %v1854_v57 }
 0xbf8   :  { %v1713_v49 = vpop.permute.xlu0 %1712 }
 0xbf9   :  { %v1719_v16 = vsel %vm172_vm6, %v1713_v49, %v1715_v59  ;;  %v1893_v59 = vadd.f32 %v1717_v55, %v4547_v56 }
 0xbfa   :  { %v1727_v3 = vsel %vm1726_vm2, %v1719_v16, 0.0  ;;  %v1742_v23 = vpop.permute.xlu1 %1741  ;;  %vm5013_vm2 = vmmov %vm5010_vm13 }
 0xbfb   :  { %v1895_v43 = vadd.f32 %v1727_v3, %v1700_v45  ;;  %v1744_v7 = vsel %vm5013_vm2, %v4623_v24, %v1738_v53 }
 0xbfc   :  { %v1740_v27 = vpop.permute.xlu0 %1739 }
 0xbfd   :  { %v1746_v13 = vsel %vm5010_vm13, %v1740_v27, %v1742_v23 }
 0xbfe   :  { %v1769_v25 = vpop.permute.xlu1 %1768  ;;  %v1754_v8 = vsel %vm1753_vm14, %v1746_v13, 0.0  ;;  %vm5015_vm14 = vmmov %vm5011_vm15 }
 0xbff   :  { %v1771_v19 = vsel %vm5015_vm14, %v4633_v14, %v1765_v46 }
 0xc00   :  { %v1767_v40 = vpop.permute.xlu0 %1766  ;;  %v1898_v62 = vadd.f32 %v1771_v19, %v1744_v7 }
 0xc01   :  { %v1773_v34 = vsel %vm5011_vm15, %v1767_v40, %v1769_v25 }
 0xc02   :  { %v1781_v11 = vsel %vm1780_vm8, %v1773_v34, 0.0  ;;  %v1796_v50 = vpop.permute.xlu1 %1795  ;;  %vm5014_vm8 = vmmov %vm5005_vm0 }
 0xc03   :  { %v1900_v52 = vadd.f32 %v1781_v11, %v1754_v8  ;;  %v1798_v20 = vsel %vm5014_vm8, %v4691_v35, %v1792_v4 }
 0xc04   :  { %v1794_v31 = vpop.permute.xlu0 %1793  ;;  %v1903_v2 = vadd.f32 %v1826_v6, %v1798_v20 }
 0xc05   :  { %v1915_v44 = vadd.f32 %v1900_v52, %v1895_v43  ;;  %v1800_v22 = vsel %vm5012_vm9, %v1794_v31, %v1796_v50  ;;  %v2686_v43 = vmul.f32 %v4809_v30, %v4809_v30 }
 0xc06   :  { %v1823_v38 = vpop.permute.xlu1 %1822  ;;  %v1808_v54 = vsel %vm1807_vm12, %v1800_v22, 0.0  ;;  %v1918_v16 = vadd.f32 %v1908_v63, %v1903_v2 }
 0xc08   :  { %v1821_v18 = vpop.permute.xlu0 %1820 }
 0xc09   :  { %v1828_v33 = vsel %vm1824_vm1, %v1821_v18, %v1823_v38  ;;  %v1827_v29 = vsel %vm1824_vm1, %v1819_v42, %v1821_v18  ;;  %vm2679_vm1 = vcmask 392192  }
 0xc0a   :  { %v1836_v1 = vsel %vm1835_vm3, %v1828_v33, 0.0  ;;  %v1851_v41 = vpop.permute.xlu1 %1850  ;;  %vm5016_vm3 = vmmov %vm5015_vm14 }
 0xc0b   :  { %v1905_v51 = vadd.f32 %v1836_v1, %v1808_v54  ;;  %v1772_v24 = vsel %vm5016_vm3, %v1765_v46, %v1767_v40  ;;  %v1913_v46 = vadd.f32 %v1898_v62, %v1893_v59 }
 0xc0c   :  { %v1849_v58 = vpop.permute.xlu0 %1848 }
 0xc0d   :  { %v1856_v47 = vsel %vm1852_vm4, %v1849_v58, %v1851_v41  ;;  %v1855_v35 = vsel %vm1852_vm4, %v1847_v32, %v1849_v58  ;;  %v4849_v32 = vadd.f32 %v1918_v16, %v1913_v46  ;;  %vm2781_vm4 = vcmask 326656  }
 0xc0e   :  { %v1879_v12 = vpop.permute.xlu1 %1878  ;;  %v1864_v36 = vsel %vm1863_vm5, %v1856_v47, 0.0  ;;  %vm5018_vm5 = vmmov %vm5005_vm0 }
 0xc0f   :  { %v1799_v14 = vsel %vm5018_vm5, %v1792_v4, %v1794_v31  ;;  %v2687_v56 = vmul.f32 %v4849_v32, %v4849_v32  ;;  %v2671_v4 = vadd.f32 %v4809_v30, %v4801_v28 }
 0xc10   :  { %v1877_v15 = vpop.permute.xlu0 %1876  ;;  %v1904_v45 = vadd.f32 %v1827_v29, %v1799_v14  ;;  %v2715_v14 = vld [vmem:[%s4913_s9] sm:$0xff]  ;;  %s3286_s9 = smov [#allocation2]  }
 0xc11   :  { %v1884_v10 = vsel %vm1880_vm11, %v1877_v15, %v1879_v12  ;;  %v1883_v60 = vsel %vm1880_vm11, %v1875_v9, %v1877_v15  ;;  %v1718_v9 = vsel %vm172_vm6, %v4795_v37, %v1713_v49  ;;  %vm5017_vm11 = vmmov %vm5013_vm2  ;;  %vm2659_vm6 = vcmask 719872   ;;  %s2803_s24 = sshll.u32 %s3286_s9, 4  ;;  %s2804_s24 = int_to_ptr.vmem [resolvable:$true] %s2803_s24 }
 0xc12   :  { %v1910_v48 = vadd.f32 %v1884_v10, %v1864_v36  ;;  %v1909_v26 = vadd.f32 %v1883_v60, %v1855_v35  ;;  %v1745_v21 = vsel %vm5017_vm11, %v1738_v53, %v1740_v27  ;;  %v1894_v42 = vadd.f32 %v1718_v9, %v4551_v61  ;;  %s3242_s2 = scalar_lea.vmem %s2804_s24, 1280  ;;  %p3247_p1 = scmp.lt.s32.totalorder %s2804_s24, %s2804_s24 }
 0xc13   :  { %v1899_v17 = vadd.f32 %v1772_v24, %v1745_v21  ;;  %v2685_v53 = vmul.f32 %v4801_v28, %v4801_v28  ;;  %v2672_v49 = vadd.f32 %v2671_v4, %v4849_v32  ;;  %p3243_p0 = scmp.ne.s32.totalorder %s2804_s24, %s3242_s2  ;;  %p3248_p2 = scmp.lt.s32.totalorder %s3242_s2, %s3242_s2 }
 0xc14   :  { %v1920_v39 = vadd.f32 %v1910_v48, %v1905_v51  ;;  %v1919_v3 = vadd.f32 %v1909_v26, %v1904_v45  ;;  %v2713_v26 = vld [vmem:[%s4912_s8] sm:$0xff]  ;;  %s3285_s8 = smov 40  }
 0xc15   :  { %v1914_v23 = vadd.f32 %v1899_v17, %v1894_v42  ;;  %v2695_v25 = vadd.f32 %v2686_v43, %v2685_v53  ;;  %p3249_p3 = por %p3248_p2, %p3247_p1 }
 0xc16   :  { %v1925_v5 = vadd.f32 %v1920_v39, %v1915_v44 }
 0xc17   :  { %v4853_v37 = vadd.f32 %v1919_v3, %v1914_v23  ;;  %v2696_v8 = vadd.f32 %v2695_v25, %v2687_v56  ;;  %p3250_p4 = pnand %p3249_p3, %p3243_p0 }
 0xc19   :  { %v2688_v27 = vmul.f32 %v4853_v37, %v4853_v37  ;;  %v2673_v40 = vadd.f32 %v2672_v49, %v4853_v37 }
 0xc1b   :  { %v2697_v31 = vadd.f32 %v2696_v8, %v2688_v27 }
 0xc46   :  { %v2650_v61 = vpop.permute.xlu0 %2649 }
 0xc47   :  { %v2670_v13 = vsel %vm2659_vm6, %v1925_v5, %v2650_v61 }
 0xc48   :  { %v2689_v34 = vmul.f32 %v2670_v13, %v2670_v13  ;;  %v2652_v11 = vpop.permute.xlu1 %2651  ;;  %v2674_v52 = vadd.f32 %v2673_v40, %v2670_v13 }
 0xc49   :  { %v2660_v50 = vsel %vm2659_vm6, %v2650_v61, %v2652_v11 }
 0xc4a   :  { %v2654_v44 = vpop.permute.xlu0 %2653  ;;  %v2698_v38 = vadd.f32 %v2697_v31, %v2689_v34  ;;  %v2690_v22 = vmul.f32 %v2660_v50, %v2660_v50  ;;  %v2675_v33 = vadd.f32 %v2674_v52, %v2660_v50 }
 0xc4b   :  { %v2661_v18 = vsel %vm2659_vm6, %v2652_v11, %v2654_v44 }
 0xc4c   :  { %v2656_v54 = vpop.permute.xlu1 %2655  ;;  %v2699_v1 = vadd.f32 %v2698_v38, %v2690_v22  ;;  %v2691_v41 = vmul.f32 %v2661_v18, %v2661_v18  ;;  %v2676_v58 = vadd.f32 %v2675_v33, %v2661_v18 }
 0xc4d   :  { %v2662_v51 = vsel %vm2659_vm6, %v2654_v44, %v2656_v54 }
 0xc4e   :  { %v2700_v47 = vadd.f32 %v2699_v1, %v2691_v41  ;;  %v2692_v12 = vmul.f32 %v2662_v51, %v2662_v51  ;;  %v2677_v15 = vadd.f32 %v2676_v58, %v2662_v51 }
 0xc50   :  { %v2701_v39 = vadd.f32 %v2700_v47, %v2692_v12 }
 0xc56   :  { %v4869_v36 = vpop.permute.xlu0 %2657 }
 0xc57   :  { %v2663_v10 = vsel %vm2659_vm6, %v2656_v54, %v4869_v36  ;;  %v2694_v48 = vmul.f32 %v4869_v36, %v4869_v36  ;;  %v2680_v7 = vsel %vm2679_vm1, %v4869_v36, 0.0 }
 0xc58   :  { %v2678_v5 = vadd.f32 %v2677_v15, %v2663_v10  ;;  %v2693_v57 = vmul.f32 %v2663_v10, %v2663_v10 }
 0xc59   :  { %v2703_v60 = vsel %vm2679_vm1, %v2694_v48, 0.0 }
 0xc5a   :  { %v2681_v20 = vadd.f32 %v2680_v7, %v2678_v5  ;;  %v2702_v0 = vadd.f32 %v2701_v39, %v2693_v57 }
 0xc5c   :  { %2682 = vadd.xlane.f32.xlu1 %v2681_v20  ;;  %v2704_v55 = vadd.f32 %v2703_v60, %v2702_v0 }
 0xc5e   :  { %2705 = vadd.xlane.f32.xlu0 %v2704_v55 }
 0xce5   :  { %v2683_v19 = vpop.xlane.xlu1 %2682 }
 0xce6   :  { %v2684_v63 = vmul.f32 0.00083333335, %v2683_v19 }
 0xce7   :  { %v2706_v6 = vpop.xlane.xlu0 %2705 }
 0xce8   :  { %v2708_v24 = vmul.f32 %v2684_v63, %v2684_v63  ;;  %v2707_v29 = vmul.f32 0.00083333335, %v2706_v6 }
 0xcea   :  { %v2709_v35 = vsub.f32 %v2707_v29, %v2708_v24 }
 0xcec   :  { %v2710_v62 = vmax.f32 %v2709_v35, 0.0 }
 0xcee   :  { %v2711_v2 = vadd.f32 1e-05, %v2710_v62 }
 0xcf0   :  { %3240 = vrsqrt.f32 %v2711_v2 }
 0xcfd   :  { %v3241_v9 = vpop.eup %3240 }
 0xcfe   :  { %v2714_v21 = vmul.f32 %v3241_v9, %v2713_v26 }
 0xd00   :  { %2720 = vperm.xlu0 %3234, %v2714_v21   ;;  %v2716_v59 = vmul.f32 %v2714_v21, %v2684_v63 }
 0xd02   :  { %v2717_v16 = vsub.f32 %v2715_v14, %v2716_v59 }
 0xd04   :  { %2735 = vperm.xlu1 %3235, %v2717_v16  }
 0xd7b   :  { %v2721_v17 = vpop.permute.xlu0 %2720 }
 0xd7c   :  { %v2723_v45 = vmul.f32 %v2721_v17, %v4801_v28  ;;  %v2724_v46 = vmul.f32 %v2721_v17, %v4809_v30  ;;  %v2725_v42 = vmul.f32 %v2721_v17, %v4849_v32  ;;  %v2726_v3 = vmul.f32 %v2721_v17, %v4853_v37 }
 0xd7d   :  { %v2728_v43 = vmul.f32 %v2721_v17, %v2660_v50  ;;  %v2727_v53 = vmul.f32 %v2721_v17, %v2670_v13  ;;  %v2730_v40 = vmul.f32 %v2721_v17, %v2662_v51  ;;  %v2729_v34 = vmul.f32 %v2721_v17, %v2661_v18 }
 0xd7e   :  { %v2732_v37 = vmul.f32 %v2721_v17, %v4869_v36  ;;  %v2731_v13 = vmul.f32 %v2721_v17, %v2663_v10 }
 0xd7f   :  { %v2736_v23 = vpop.permute.xlu1 %2735 }
 0xd80   :  { %v2738_v56 = vadd.f32 %v2736_v23, %v2723_v45  ;;  %v2739_v4 = vadd.f32 %v2736_v23, %v2724_v46  ;;  %v2740_v61 = vadd.f32 %v2736_v23, %v2725_v42  ;;  %v2741_v49 = vadd.f32 %v2736_v23, %v2726_v3 }
 0xd81   :  { %v2743_v27 = vadd.f32 %v2736_v23, %v2728_v43  ;;  %v2742_v25 = vadd.f32 %v2736_v23, %v2727_v53  ;;  %v2745_v32 = vadd.f32 %v2736_v23, %v2730_v40  ;;  %v2744_v44 = vadd.f32 %v2736_v23, %v2729_v34 }
 0xd82   :  { %v2748_v8 = vmax.f32 %v2738_v56, 0.0  ;;  %v2749_v11 = vmax.f32 %v2739_v4, 0.0  ;;  %v2750_v28 = vmax.f32 %v2740_v61, 0.0  ;;  %v2751_v52 = vmax.f32 %v2741_v49, 0.0 }
 0xd83   :  { %v2753_v30 = vmax.f32 %v2743_v27, 0.0  ;;  %v2752_v31 = vmax.f32 %v2742_v25, 0.0  ;;  %v2755_v50 = vmax.f32 %v2745_v32, 0.0  ;;  %v2754_v38 = vmax.f32 %v2744_v44, 0.0 }
 0xd84   :  { %2758 = vst [vmem:[#allocation2] sm:$0xff] %v2748_v8  ;;  %2759 = vst [vmem:[#allocation2 + $0x8] sm:$0xff] %v2749_v11  ;;  %v2747_v22 = vadd.f32 %v2736_v23, %v2732_v37  ;;  %v2746_v18 = vadd.f32 %v2736_v23, %v2731_v13 }
 0xd85   :  { %2760 = vst [vmem:[#allocation2 + $0x10] sm:$0xff] %v2750_v28  ;;  %2761 = vst [vmem:[#allocation2 + $0x18] sm:$0xff] %v2751_v52  ;;  %2771 = vrot.lane.b32.xlu0 %v2753_v30, %s3285_s8  ;;  %2769 = vrot.lane.b32.xlu1 %v2752_v31, %s3285_s8 }
 0xd86   :  { %2762 = vst.msk [vmem:[#allocation2 + $0x20] sm:$0xff] %vm2659_vm6, %v2752_v31  ;;  %v2757_v33 = vmax.f32 %v2747_v22, 0.0  ;;  %v2756_v54 = vmax.f32 %v2746_v18, 0.0 }
 0xd89   :  { %2775 = vrot.lane.b32.xlu0 %v2755_v50, %s3285_s8  ;;  %2773 = vrot.lane.b32.xlu1 %v2754_v38, %s3285_s8 }
 0xd8d   :  { %2779 = vrot.lane.b32.xlu0 %v2757_v33, %s3285_s8  ;;  %2777 = vrot.lane.b32.xlu1 %v2756_v54, %s3285_s8 }
 0xdf7   :  { %v2772_v1 = vpop.permute.xlu0 %2771  ;;  %v2770_v41 = vpop.permute.xlu1 %2769 }
 0xdf8   :  { %v2782_v51 = vsel %vm2781_vm4, %v2770_v41, %v2772_v1 }
 0xdf9   :  { %2793 = vst [vmem:[#allocation2 + $0x28] sm:$0xff] %v2782_v51 }
 0xdfb   :  { %v2776_v58 = vpop.permute.xlu0 %2775  ;;  %v2774_v47 = vpop.permute.xlu1 %2773 }
 0xdfc   :  { %v2783_v12 = vsel %vm2781_vm4, %v2772_v1, %v2774_v47  ;;  %v2784_v15 = vsel %vm2781_vm4, %v2774_v47, %v2776_v58 }
 0xdfd   :  { %2794 = vst [vmem:[#allocation2 + $0x30] sm:$0xff] %v2783_v12  ;;  %2795 = vst [vmem:[#allocation2 + $0x38] sm:$0xff] %v2784_v15 }
 0xdff   :  { %v2780_v36 = vpop.permute.xlu0 %2779  ;;  %v2778_v10 = vpop.permute.xlu1 %2777 }
 0xe00   :  { %v2785_v48 = vsel %vm2781_vm4, %v2776_v58, %v2778_v10  ;;  %v2786_v39 = vsel %vm2781_vm4, %v2778_v10, %v2780_v36 }
 0xe01   :  { %2796 = vst [vmem:[#allocation2 + $0x40] sm:$0xff] %v2785_v48  ;;  %2797 = vst.msk [vmem:[#allocation2 + $0x48] sm:$0xff] %vm2659_vm6, %v2786_v39 }
 0xe02   :  { %3253 = shalt.err (!%p3250_p4)
}
 0xe03   :  { %s3287_s1 = smov 640  }
 0xe04   :  { %2809 = dma.vmem_to_hbm [thread:$0]  %s2804_s24, 1280, %s4914_s10, [#allocation3], %s3287_s1, %s3287_s1, %s3285_s8  }
 0xe05   :  { %3262 = dma.done.wait [#allocation3], 1280  }
 0xe06   :  { %3263 = vsyncadd [#allocation3], 4294966016 }
 0xe07   :  { %2813 = vsyncpa [#allocation3], 1 }

</bundles_post_ra>
